<compile_context>
chip_gen: v7x
topology: tpu7x:2x2x1
jax: 0.10.0
libtpu: 0.0.40
codegen_flags: <defaults>
</compile_context>

<pallas_src>
import functools

import jax
import jax.numpy as jnp
from jax.experimental import pallas as pl
from jax.experimental.pallas import tpu as pltpu


def _round_up(v, m):
    return ((v + m - 1) // m) * m


_VMEM_LIMIT = 48 * 1024 * 1024  # headroom below v7x's 64 MiB physical VMEM


# -----------------------------------------------------------------------------
# Pallas kernel 1: one GeneralizedRelationalConv layer
#   (distmult messages / sum aggregation / Linear(cat) / LayerNorm / ReLU /
#    fused short-cut residual).
# Grid = (batch, dst_node_tile), dst-tile axis "arbitrary" so the per-batch
# message table cached in VMEM scratch stays valid (also correct on v7x megacore
# where only the batch axis is sharded across the two TensorCores).
# -----------------------------------------------------------------------------
def _rel_conv_kernel(hidx_ref, x_ref, rel_ref, q_ref, adj_ref,
                     win_ref, wup_ref, b_ref, g_ref, bt_ref,
                     o_ref, xs_ref, *, d_real, dst_tile, add_residual):
    # hidx_ref: (B,)          i32  SMEM scalar-prefetch: boundary (head) node ids
    # x_ref:    (1, N, Dp)    f32  layer input, all source nodes of this batch
    # rel_ref:  (1, R, Dp)    f32  relation embeddings
    # q_ref:    (1, 1, Dp)    f32  per-batch query row (boundary message)
    # adj_ref:  (TM, R*N)     bf16 flattened adjacency adj[t, r*N + h]
    # win/wup:  (Dp, Dp)      bf16 split halves of Linear(cat([input, update]))
    # b/g/bt:   (1, Dp)       f32  bias / LayerNorm gamma / beta
    # xs_ref:   (R*N, Dp)     bf16 VMEM scratch: per-batch rel ⊙ x message table
    m = pl.program_id(1)

    # Build xs[r*N + h, d] = rel[r, d] * x[h, d] ONCE per batch (dst axis is
    # sequential).  f32 multiply (v5e has no bf16 VALUs), bf16 store for the MXU.
    @pl.when(m == 0)
    def _():
        x = x_ref[0]                                     # (N, Dp)
        rel = rel_ref[0]                                 # (R, Dp)
        r_types, dp = rel.shape
        n_src = x.shape[0]
        xs = (rel[:, None, :] * x[None, :, :]).reshape(r_types * n_src, dp)
        xs_ref[...] = xs.astype(jnp.bfloat16)

    # dst rows of this tile: slice the already-resident full-x block (no extra DMA)
    row0 = pl.multiple_of(m * dst_tile, dst_tile)
    xin = x_ref[0, pl.ds(row0, dst_tile), :]             # (TM, Dp) f32

    # distmult messages of ALL relation types folded into ONE MXU matmul:
    #   agg[t, d] = sum_{r,h} adj[r, t, h] * x[h, d] * rel[r, d]
    agg = jnp.dot(adj_ref[...], xs_ref[...], preferred_element_type=jnp.float32)

    # boundary message: add the query row at the head node if it lies in this tile
    hrow = hidx_ref[pl.program_id(0)] - row0
    rows = jax.lax.broadcasted_iota(jnp.int32, agg.shape, 0)
    agg = agg + jnp.where(rows == hrow, q_ref[0], 0.0)

    # update: Linear(cat([input, update])) as two K=Dp bf16 matmuls (no concat copy)
    h = (jnp.dot(xin.astype(jnp.bfloat16), win_ref[...],
                 preferred_element_type=jnp.float32)
         + jnp.dot(agg.astype(jnp.bfloat16), wup_ref[...],
                   preferred_element_type=jnp.float32)
         + b_ref[...])

    # LayerNorm(eps=1e-5) over the REAL (unpadded) feature width, then ReLU.
    lane = jax.lax.broadcasted_iota(jnp.int32, h.shape, 1)
    valid = lane < d_real
    hm = jnp.where(valid, h, 0.0)
    mean = jnp.sum(hm, axis=-1, keepdims=True) * (1.0 / d_real)
    hc = jnp.where(valid, hm - mean, 0.0)
    var = jnp.sum(hc * hc, axis=-1, keepdims=True) * (1.0 / d_real)
    out = jnp.maximum(hc * jax.lax.rsqrt(var + 1e-5) * g_ref[...] + bt_ref[...],
                      0.0)
    if add_residual:        # fused short-cut residual; padding lanes stay exactly 0
        out = out + xin
    o_ref[0] = out


def relational_conv(x, rel, query, h_idx, adj_flat,
                    w_in, w_up, b, gamma, beta, d_real, add_residual=True):
    B, N, Dp = x.shape
    R = rel.shape[1]
    RN = adj_flat.shape[1]
    assert RN == R * N

    # TODO(synk): for production-scale graphs on v7x (64 MiB VMEM) the R*N
    #             contraction must be tiled with an extra "arbitrary" grid axis and
    #             an f32 VMEM accumulator; the demo sizes fit in a single block.
    dst_tile = N if N <= 512 else 512
    assert N % dst_tile == 0, "pad num_nodes to a multiple of the dst tile"
    n_tiles = N // dst_tile

    rel_map = ((lambda i, m, h: (i, 0, 0)) if rel.shape[0] == B
               else (lambda i, m, h: (0, 0, 0)))          # batch-independent rels

    kernel = functools.partial(_rel_conv_kernel, d_real=d_real,
                               dst_tile=dst_tile, add_residual=add_residual)
    return pl.pallas_call(
        kernel,
        out_shape=jax.ShapeDtypeStruct((B, N, Dp), jnp.float32),
        grid_spec=pltpu.PrefetchScalarGridSpec(
            num_scalar_prefetch=1,
            grid=(B, n_tiles),
            in_specs=[
                pl.BlockSpec((1, N, Dp), lambda i, m, h: (i, 0, 0)),     # x (src)
                pl.BlockSpec((1, R, Dp), rel_map),                       # relations
                pl.BlockSpec((1, 1, Dp), lambda i, m, h: (i, 0, 0)),     # query row
                pl.BlockSpec((dst_tile, RN), lambda i, m, h: (m, 0)),    # adjacency
                pl.BlockSpec((Dp, Dp), lambda i, m, h: (0, 0)),          # W_input
                pl.BlockSpec((Dp, Dp), lambda i, m, h: (0, 0)),          # W_update
                pl.BlockSpec((1, Dp), lambda i, m, h: (0, 0)),           # bias
                pl.BlockSpec((1, Dp), lambda i, m, h: (0, 0)),           # gamma
                pl.BlockSpec((1, Dp), lambda i, m, h: (0, 0)),           # beta
            ],
            out_specs=pl.BlockSpec((1, dst_tile, Dp), lambda i, m, h: (i, m, 0)),
            scratch_shapes=[pltpu.VMEM((RN, Dp), jnp.bfloat16)],
        ),
        compiler_params=pltpu.CompilerParams(
            dimension_semantics=("parallel", "arbitrary"),
            vmem_limit_bytes=_VMEM_LIMIT),
    )(h_idx.astype(jnp.int32), x, rel, query[:, None, :], adj_flat,
      w_in, w_up, b, gamma, beta)


# -----------------------------------------------------------------------------
# Pallas kernel 2: scoring MLP, transposed so scores lie on the lane dimension.
#   Linear(F,F) -> ReLU -> Linear(F,1)   ==>   (1, Kp) lane-dense output per batch.
# The query half of feature=[tail_hidden ; query] is folded into a per-batch
# effective bias; the out-dim-1 second Linear is a VPU multiply + sublane reduce.
# -----------------------------------------------------------------------------
def _mlp_kernel(ft_ref, b1e_ref, w1xt_ref, w2_ref, b2_ref, o_ref):
    # ft_ref:  (1, D, Kp) bf16  tail hidden features, transposed (tails on lanes)
    # b1e_ref: (1, F, 1)  f32   b1 + W1_query @ query[b]
    # w1xt:    (F, D)     bf16  transposed "hidden" half of the first Linear
    # w2:      (F, 1)     f32   second Linear weight (column)
    # b2:      (1, 1)     f32   SMEM scalar
    h = jnp.dot(w1xt_ref[...], ft_ref[0],
                preferred_element_type=jnp.float32) + b1e_ref[0]
    h = jnp.maximum(h, 0.0)                                          # (F, Kp)
    s = jnp.sum(w2_ref[...] * h, axis=0, keepdims=True) + b2_ref[0, 0]
    o_ref[0] = s                                                     # (1, Kp)


def mlp_score(x_t, b1_eff, w1xt, w2, b2):
    B, D, Kp = x_t.shape
    F = w1xt.shape[0]
    out = pl.pallas_call(
        _mlp_kernel,
        out_shape=jax.ShapeDtypeStruct((B, 1, Kp), jnp.float32),
        grid=(B,),
        in_specs=[
            pl.BlockSpec((1, D, Kp), lambda i: (i, 0, 0)),
            pl.BlockSpec((1, F, 1), lambda i: (i, 0, 0)),
            pl.BlockSpec((F, D), lambda i: (0, 0)),
            pl.BlockSpec((F, 1), lambda i: (0, 0)),
            pl.BlockSpec(memory_space=pltpu.MemorySpace.SMEM),       # b2 scalar
        ],
        out_specs=pl.BlockSpec((1, 1, Kp), lambda i: (i, 0, 0)),
        compiler_params=pltpu.CompilerParams(
            dimension_semantics=("parallel",),
            vmem_limit_bytes=_VMEM_LIMIT),
    )(x_t, b1_eff, w1xt, w2, b2)
    return out[:, 0, :]


# -----------------------------------------------------------------------------
# Model glue (parameter setup with lane padding, adjacency flattening, gathers)
# -----------------------------------------------------------------------------
def flatten_adj(adj, r_pad=None):
    """(R, N, N) dense relational adjacency -> (N, R_pad*N) bf16 with [t, r*N+h]."""
    R, N, _ = adj.shape
    if r_pad is None:
        r_pad = _round_up(R, 8)
    adj = jnp.pad(adj, ((0, r_pad - R), (0, 0), (0, 0)))
    # bf16 is exact for edge multiplicities <= 256; keep f32 beyond that.
    return jnp.transpose(adj, (1, 0, 2)).reshape(N, r_pad * N).astype(jnp.bfloat16)


def _linear_init(key, fan_in, fan_out):
    k1, k2 = jax.random.split(key)
    bound = 1.0 / (fan_in ** 0.5)
    w = jax.random.uniform(k1, (fan_in, fan_out), jnp.float32, -bound, bound)
    b = jax.random.uniform(k2, (fan_out,), jnp.float32, -bound, bound)
    return w, b


def _split_conv_linear(w, b, dim, dim_pad):
    # w: (2*dim, dim) for Linear(cat([input, update])) -> two (Dp, Dp) bf16 halves
    # so the kernel runs two K=Dp matmuls instead of building a concat.
    w_in = jnp.zeros((dim_pad, dim_pad), jnp.float32).at[:dim, :dim].set(w[:dim])
    w_up = jnp.zeros((dim_pad, dim_pad), jnp.float32).at[:dim, :dim].set(w[dim:])
    b_p = jnp.zeros((1, dim_pad), jnp.float32).at[0, :dim].set(b)
    return w_in.astype(jnp.bfloat16), w_up.astype(jnp.bfloat16), b_p


def init_params(key, dim, dim_pad, num_relgraph_rel, num_layers=2):
    assert dim % 8 == 0 and dim_pad % 128 == 0
    keys = iter(jax.random.split(key, 64))
    params = {"dim": dim, "dim_pad": dim_pad}

    gamma = jnp.zeros((1, dim_pad), jnp.float32).at[0, :dim].set(1.0)
    beta = jnp.zeros((1, dim_pad), jnp.float32)
    rg_pad = _round_up(num_relgraph_rel, 8)          # pad relation-graph edge types

    # RelNBFNet layers: own relation embeddings (4 fundamental types), dependent=False
    rel_layers = []
    for _ in range(num_layers):
        w, b = _linear_init(next(keys), 2 * dim, dim)
        w_in, w_up, b_p = _split_conv_linear(w, b, dim, dim_pad)
        emb = jnp.zeros((rg_pad, dim_pad), jnp.float32).at[
            :num_relgraph_rel, :dim].set(
            jax.random.normal(next(keys), (num_relgraph_rel, dim), jnp.float32))
        rel_layers.append(dict(rel_emb=emb, w_in=w_in, w_up=w_up, b=b_p,
                               gamma=gamma, beta=beta))
    params["rel_layers"] = rel_layers

    # EntityNBFNet layers: project_relations=True (2-layer MLP projection of rel reps)
    ent_layers = []
    for _ in range(num_layers):
        pw1, pb1 = _linear_init(next(keys), dim, dim)
        pw2, pb2 = _linear_init(next(keys), dim, dim)
        pw1_p = jnp.zeros((dim_pad, dim_pad), jnp.float32).at[:dim, :dim].set(pw1)
        pb1_p = jnp.zeros((1, dim_pad), jnp.float32).at[0, :dim].set(pb1)
        pw2_p = jnp.zeros((dim_pad, dim_pad), jnp.float32).at[:dim, :dim].set(pw2)
        pb2_p = jnp.zeros((1, dim_pad), jnp.float32).at[0, :dim].set(pb2)
        w, b = _linear_init(next(keys), 2 * dim, dim)
        w_in, w_up, b_p = _split_conv_linear(w, b, dim, dim_pad)
        ent_layers.append(dict(proj_w1=pw1_p, proj_b1=pb1_p,
                               proj_w2=pw2_p, proj_b2=pb2_p,
                               w_in=w_in, w_up=w_up, b=b_p,
                               gamma=gamma, beta=beta))
    params["ent_layers"] = ent_layers

    # scoring MLP: feature = [tail_hidden(dim) ; query(dim)] (real widths).
    feat = 2 * dim
    w1, b1 = _linear_init(next(keys), feat, feat)
    w2, b2 = _linear_init(next(keys), feat, 1)
    params["mlp"] = dict(
        w1xt=jnp.transpose(w1[:dim]).astype(jnp.bfloat16),   # (feat, dim) bf16
        w1q=w1[dim:],                                        # (dim, feat) f32
        b1=b1,                                               # (feat,)
        w2=w2,                                               # (feat, 1)
        b2=b2.reshape(1, 1))
    return params


def rel_nbfnet_forward(params, adj_rel_flat, r_query):
    """RelNBFNet.forward: Bellman-Ford over the relation graph -> [B, R_ent, Dp]."""
    B = r_query.shape[0]
    D, Dp = params["dim"], params["dim_pad"]
    n_nodes = adj_rel_flat.shape[0]
    query = jnp.zeros((B, Dp), jnp.float32).at[:, :D].set(1.0)      # torch.ones
    boundary = jnp.zeros((B, n_nodes, Dp), jnp.float32)
    boundary = boundary.at[jnp.arange(B), r_query].add(query)       # scatter_add_

    layer_input = boundary
    # TODO(synk): for this tiny relation graph (N == #relations) folding the batch
    #             into the matmul lane dim (or plain XLA) would use the MXU better.
    for lyr in params["rel_layers"]:
        layer_input = relational_conv(                              # residual fused
            layer_input, lyr["rel_emb"][None], query, r_query, adj_rel_flat,
            lyr["w_in"], lyr["w_up"], lyr["b"], lyr["gamma"], lyr["beta"], D)
    return layer_input                                              # concat_hidden=False


def entity_nbfnet_forward(params, adj_ent_flat, batch, relation_reps):
    """EntityNBFNet.forward (eval / synthetic path): returns scores [B, K]."""
    h_index, t_index, r_index = batch[..., 0], batch[..., 1], batch[..., 2]
    B, K = h_index.shape
    D, Dp = params["dim"], params["dim_pad"]
    N = adj_ent_flat.shape[0]

    h0 = h_index[:, 0]
    query = relation_reps[jnp.arange(B), r_index[:, 0]]             # [B, Dp]
    boundary = jnp.zeros((B, N, Dp), jnp.float32)
    boundary = boundary.at[jnp.arange(B), h0].add(query)

    layer_input = boundary
    for lyr in params["ent_layers"]:
        # relation projection MLP (project_relations=True)
        rel = jnp.maximum(relation_reps @ lyr["proj_w1"] + lyr["proj_b1"], 0.0)
        rel = rel @ lyr["proj_w2"] + lyr["proj_b2"]                 # [B, R, Dp]
        layer_input = relational_conv(                              # residual fused
            layer_input, rel, query, h0, adj_ent_flat,
            lyr["w_in"], lyr["w_up"], lyr["b"], lyr["gamma"], lyr["beta"], D)

    # Gather the K tail rows (real lanes only) and lay the tails on the lane dim.
    # The query half of feature=[tail ; query] is a rank-1 term folded into an
    # effective per-batch bias, so no (B, K, 2*Dp) concat is materialized.
    # TODO(synk): fusing this gather/transpose into the scoring kernel
    #             (scalar-prefetched t_index + pl.Element row gather) would remove
    #             the remaining XLA HBM round trip at eval-scale K.
    m = params["mlp"]
    idx = jnp.broadcast_to(t_index[..., None], (B, K, D))
    tail = jnp.take_along_axis(layer_input[:, :, :D], idx, axis=1)  # [B, K, D]
    Kp = _round_up(K, 128)
    x_t = jnp.swapaxes(tail, 1, 2)                                  # [B, D, K]
    x_t = jnp.pad(x_t, ((0, 0), (0, 0), (0, Kp - K))).astype(jnp.bfloat16)
    b1_eff = (m["b1"][None, :] + query[:, :D] @ m["w1q"])[:, :, None]  # [B, F, 1]

    scores = mlp_score(x_t, b1_eff, m["w1xt"], m["w2"], m["b2"])    # [B, Kp]
    return scores[:, :K]


def ultra_forward(params, adj_ent_flat, adj_rel_flat, batch):
    r_query = batch[:, 0, 2]                                        # r_index[:, 0]
    relation_reps = rel_nbfnet_forward(params, adj_rel_flat, r_query)
    return entity_nbfnet_forward(params, adj_ent_flat, batch, relation_reps)


# -----------------------------------------------------------------------------
if __name__ == "__main__":
    key = jax.random.PRNGKey(0)
    N_ENT = 32            # entity-graph nodes
    N_REL = 8             # entity relation types == relation-graph nodes
    N_RG_TYPES = 4        # relation-graph edge types (h2h/t2t/h2t/t2h); padded to 8
    D = 64                # real hidden dim (ULTRA default)
    D_PAD = _round_up(D, 128)
    B, K = 2, 4           # batch, tails per query
    E_ENT, E_RG = 96, 24

    keys = jax.random.split(key, 12)

    # synthetic entity graph -> dense relational adjacency [R, dst, src]
    eh = jax.random.randint(keys[0], (E_ENT,), 0, N_ENT)
    et = jax.random.randint(keys[1], (E_ENT,), 0, N_ENT)
    er = jax.random.randint(keys[2], (E_ENT,), 0, N_REL)
    adj_ent = jnp.zeros((N_REL, N_ENT, N_ENT), jnp.float32).at[er, et, eh].add(1.0)

    # synthetic relation graph
    gh = jax.random.randint(keys[3], (E_RG,), 0, N_REL)
    gt = jax.random.randint(keys[4], (E_RG,), 0, N_REL)
    gr = jax.random.randint(keys[5], (E_RG,), 0, N_RG_TYPES)
    adj_rel = jnp.zeros((N_RG_TYPES, N_REL, N_REL), jnp.float32).at[gr, gt, gh].add(1.0)

    adj_ent_flat = flatten_adj(adj_ent)          # (N_ENT, 8*N_ENT)   bf16
    adj_rel_flat = flatten_adj(adj_rel)          # (N_REL, 8*N_REL)   bf16

    # batch [B, K, 3] = (h, t, r); h and r constant across the K tails (as asserted)
    h_idx = jax.random.randint(keys[6], (B, 1), 0, N_ENT)
    r_idx = jax.random.randint(keys[7], (B, 1), 0, N_REL)
    t_idx = jax.random.randint(keys[8], (B, K), 0, N_ENT)
    batch = jnp.stack([jnp.broadcast_to(h_idx, (B, K)),
                       t_idx,
                       jnp.broadcast_to(r_idx, (B, K))], axis=-1).astype(jnp.int32)

    params = init_params(keys[9], D, D_PAD, N_RG_TYPES, num_layers=2)

    fwd = jax.jit(functools.partial(ultra_forward, params))
    score = fwd(adj_ent_flat, adj_rel_flat, batch)
    jax.block_until_ready(score)
    assert score.shape == (B, K) and score.dtype == jnp.float32
    print("KERNEL_OK")
</pallas_src>

<mosaic_0001>
module attributes {stable_mosaic.version = 11 : i64} {
  func.func @_rel_conv_kernel(%arg0: i32, %arg1: i32, %arg2: memref<2xi32, #tpu.memory_space<smem>>, %arg3: memref<1x8x128xf32, #tpu.memory_space<vmem>>, %arg4: memref<1x8x128xf32, #tpu.memory_space<vmem>>, %arg5: memref<1x1x128xf32, #tpu.memory_space<vmem>>, %arg6: memref<8x64xbf16, #tpu.memory_space<vmem>>, %arg7: memref<128x128xbf16, #tpu.memory_space<vmem>>, %arg8: memref<128x128xbf16, #tpu.memory_space<vmem>>, %arg9: memref<1x128xf32, #tpu.memory_space<vmem>>, %arg10: memref<1x128xf32, #tpu.memory_space<vmem>>, %arg11: memref<1x128xf32, #tpu.memory_space<vmem>>, %arg12: memref<1x8x128xf32, #tpu.memory_space<vmem>>, %arg13: memref<64x128xbf16, #tpu.memory_space<vmem>>) attributes {dimension_semantics = [#tpu.dimension_semantics<parallel>, #tpu.dimension_semantics<arbitrary>], iteration_bounds = array<i64: 2, 1>, scalar_prefetch = 1 : i64, scratch_operands = 1 : i64, tpu.core_type = #tpu.core_type<tc>, window_params = [{transform_indices = @transform_0, window_bounds = array<i64: 1, 8, 128>}, {pipeline_mode = #tpu.pipeline_mode<synchronous>, transform_indices = @transform_1, window_bounds = array<i64: 1, 8, 128>}, {transform_indices = @transform_2, window_bounds = array<i64: 1, 1, 128>}, {transform_indices = @transform_3, window_bounds = array<i64: 8, 64>}, {pipeline_mode = #tpu.pipeline_mode<synchronous>, transform_indices = @transform_4, window_bounds = array<i64: 128, 128>}, {pipeline_mode = #tpu.pipeline_mode<synchronous>, transform_indices = @transform_5, window_bounds = array<i64: 128, 128>}, {pipeline_mode = #tpu.pipeline_mode<synchronous>, transform_indices = @transform_6, window_bounds = array<i64: 1, 128>}, {pipeline_mode = #tpu.pipeline_mode<synchronous>, transform_indices = @transform_7, window_bounds = array<i64: 1, 128>}, {pipeline_mode = #tpu.pipeline_mode<synchronous>, transform_indices = @transform_8, window_bounds = array<i64: 1, 128>}, {transform_indices = @transform_9, window_bounds = array<i64: 1, 8, 128>}]} {
    %c0_i32 = arith.constant 0 : i32
    %0 = arith.cmpi eq, %arg1, %c0_i32 : i32
    %1 = arith.extui %0 : i1 to i32
    %c0_i32_0 = arith.constant 0 : i32
    %2 = arith.cmpi ne, %1, %c0_i32_0 : i32
    scf.if %2 {
      %c0_33 = arith.constant 0 : index
      %c0_34 = arith.constant 0 : index
      %c0_35 = arith.constant 0 : index
      %69 = vector.load %arg3[%c0_33, %c0_34, %c0_35] : memref<1x8x128xf32, #tpu.memory_space<vmem>>, vector<1x8x128xf32>
      %70 = vector.shape_cast %69 : vector<1x8x128xf32> to vector<8x128xf32>
      %c0_36 = arith.constant 0 : index
      %c0_37 = arith.constant 0 : index
      %c0_38 = arith.constant 0 : index
      %71 = vector.load %arg4[%c0_36, %c0_37, %c0_38] : memref<1x8x128xf32, #tpu.memory_space<vmem>>, vector<1x8x128xf32>
      %72 = vector.shape_cast %71 : vector<1x8x128xf32> to vector<8x128xf32>
      %73 = vector.shape_cast %72 : vector<8x128xf32> to vector<8x1x128xf32>
      %74 = vector.shape_cast %70 : vector<8x128xf32> to vector<1x8x128xf32>
      %75 = vector.broadcast %73 : vector<8x1x128xf32> to vector<8x8x128xf32>
      %76 = vector.broadcast %74 : vector<1x8x128xf32> to vector<8x8x128xf32>
      %77 = arith.mulf %75, %76 : vector<8x8x128xf32>
      %78 = vector.shape_cast %77 : vector<8x8x128xf32> to vector<64x128xf32>
      %79 = arith.truncf %78 : vector<64x128xf32> to vector<64x128xbf16>
      %c0_39 = arith.constant 0 : index
      %c0_40 = arith.constant 0 : index
      %80 = vector.load %arg13[%c0_39, %c0_40] : memref<64x128xbf16, #tpu.memory_space<vmem>>, vector<64x128xbf16>
      tpu.vector_store %arg13[%c0_39, %c0_40], %79 {strides = array<i32>} : memref<64x128xbf16, #tpu.memory_space<vmem>>, vector<64x128xbf16>,
    } else {
    }
    %c8_i32 = arith.constant 8 : i32
    %3 = arith.muli %arg1, %c8_i32 : i32
    %4 = tpu.assume_multiple %3, 8 : i32
    %c0 = arith.constant 0 : index
    %5 = arith.index_cast %4 : i32 to index
    %c0_1 = arith.constant 0 : index
    %6 = vector.load %arg3[%c0, %5, %c0_1] : memref<1x8x128xf32, #tpu.memory_space<vmem>>, vector<1x8x128xf32>
    %7 = vector.shape_cast %6 : vector<1x8x128xf32> to vector<8x128xf32>
    %c0_2 = arith.constant 0 : index
    %c0_3 = arith.constant 0 : index
    %8 = vector.load %arg6[%c0_2, %c0_3] : memref<8x64xbf16, #tpu.memory_space<vmem>>, vector<8x64xbf16>
    %c0_4 = arith.constant 0 : index
    %c0_5 = arith.constant 0 : index
    %9 = vector.load %arg13[%c0_4, %c0_5] : memref<64x128xbf16, #tpu.memory_space<vmem>>, vector<64x128xbf16>
    %cst = arith.constant dense<0.000000e+00> : vector<8x128xf32>
    %10 = tpu.matmul %8, %9, %cst {dimension_numbers = #tpu.dot_dimension_numbers<[1], [0], [0], [1], [0, 0, 1, 1], [], []>} : vector<8x64xbf16>, vector<64x128xbf16>, vector<8x128xf32> -> vector<8x128xf32>
    %11 = arith.index_cast %arg0 : i32 to index
    %12 = memref.load %arg2[%11] : memref<2xi32, #tpu.memory_space<smem>>
    %13 = arith.subi %12, %4 : i32
    %14 = tpu.iota {dimensions = array<i32: 0>} : vector<8x128xi32>
    %15 = vector.broadcast %13 : i32 to vector<8x128xi32>
    %16 = arith.cmpi eq, %14, %15 : vector<8x128xi32>
    %c0_6 = arith.constant 0 : index
    %c0_7 = arith.constant 0 : index
    %c0_8 = arith.constant 0 : index
    %17 = vector.load %arg5[%c0_6, %c0_7, %c0_8] : memref<1x1x128xf32, #tpu.memory_space<vmem>>, vector<1x1x128xf32>
    %18 = vector.shape_cast %17 : vector<1x1x128xf32> to vector<1x128xf32>
    %cst_9 = arith.constant 0.000000e+00 : f32
    %19 = vector.shape_cast %18 : vector<1x128xf32> to vector<1x128xf32>
    %20 = vector.broadcast %19 : vector<1x128xf32> to vector<8x128xf32>
    %21 = vector.broadcast %cst_9 : f32 to vector<8x128xf32>
    %22 = arith.select %16, %20, %21 : vector<8x128xi1>, vector<8x128xf32>
    %23 = arith.addf %10, %22 : vector<8x128xf32>
    %24 = arith.truncf %7 : vector<8x128xf32> to vector<8x128xbf16>
    %c0_10 = arith.constant 0 : index
    %c0_11 = arith.constant 0 : index
    %25 = vector.load %arg7[%c0_10, %c0_11] : memref<128x128xbf16, #tpu.memory_space<vmem>>, vector<128x128xbf16>
    %cst_12 = arith.constant dense<0.000000e+00> : vector<8x128xf32>
    %26 = tpu.matmul %24, %25, %cst_12 {dimension_numbers = #tpu.dot_dimension_numbers<[1], [0], [0], [1], [0, 0, 1, 1], [], []>} : vector<8x128xbf16>, vector<128x128xbf16>, vector<8x128xf32> -> vector<8x128xf32>
    %27 = arith.truncf %23 : vector<8x128xf32> to vector<8x128xbf16>
    %c0_13 = arith.constant 0 : index
    %c0_14 = arith.constant 0 : index
    %28 = vector.load %arg8[%c0_13, %c0_14] : memref<128x128xbf16, #tpu.memory_space<vmem>>, vector<128x128xbf16>
    %cst_15 = arith.constant dense<0.000000e+00> : vector<8x128xf32>
    %29 = tpu.matmul %27, %28, %cst_15 {dimension_numbers = #tpu.dot_dimension_numbers<[1], [0], [0], [1], [0, 0, 1, 1], [], []>} : vector<8x128xbf16>, vector<128x128xbf16>, vector<8x128xf32> -> vector<8x128xf32>
    %30 = arith.addf %26, %29 : vector<8x128xf32>
    %c0_16 = arith.constant 0 : index
    %c0_17 = arith.constant 0 : index
    %31 = vector.load %arg9[%c0_16, %c0_17] : memref<1x128xf32, #tpu.memory_space<vmem>>, vector<1x128xf32>
    %32 = vector.broadcast %31 : vector<1x128xf32> to vector<8x128xf32>
    %33 = arith.addf %30, %32 : vector<8x128xf32>
    %34 = tpu.iota {dimensions = array<i32: 1>} : vector<8x128xi32>
    %c64_i32 = arith.constant 64 : i32
    %35 = vector.broadcast %c64_i32 : i32 to vector<8x128xi32>
    %36 = arith.cmpi slt, %34, %35 : vector<8x128xi32>
    %cst_18 = arith.constant 0.000000e+00 : f32
    %37 = vector.broadcast %cst_18 : f32 to vector<8x128xf32>
    %38 = arith.select %36, %33, %37 : vector<8x128xi1>, vector<8x128xf32>
    %cst_19 = arith.constant dense<0.000000e+00> : vector<8xf32>
    %39 = vector.multi_reduction <add>, %38, %cst_19 [1] : vector<8x128xf32> to vector<8xf32>
    %40 = vector.shape_cast %39 : vector<8xf32> to vector<8x1xf32>
    %cst_20 = arith.constant 1.562500e-02 : f32
    %41 = vector.broadcast %cst_20 : f32 to vector<8x1xf32>
    %42 = arith.mulf %40, %41 : vector<8x1xf32>
    %43 = vector.broadcast %42 : vector<8x1xf32> to vector<8x128xf32>
    %44 = arith.subf %38, %43 : vector<8x128xf32>
    %cst_21 = arith.constant 0.000000e+00 : f32
    %45 = vector.broadcast %cst_21 : f32 to vector<8x128xf32>
    %46 = arith.select %36, %44, %45 : vector<8x128xi1>, vector<8x128xf32>
    %47 = arith.mulf %46, %46 : vector<8x128xf32>
    %cst_22 = arith.constant dense<0.000000e+00> : vector<8xf32>
    %48 = vector.multi_reduction <add>, %47, %cst_22 [1] : vector<8x128xf32> to vector<8xf32>
    %49 = vector.shape_cast %48 : vector<8xf32> to vector<8x1xf32>
    %cst_23 = arith.constant 1.562500e-02 : f32
    %50 = vector.broadcast %cst_23 : f32 to vector<8x1xf32>
    %51 = arith.mulf %49, %50 : vector<8x1xf32>
    %cst_24 = arith.constant 9.99999974E-6 : f32
    %52 = vector.broadcast %cst_24 : f32 to vector<8x1xf32>
    %53 = arith.addf %51, %52 : vector<8x1xf32>
    %54 = math.rsqrt %53 : vector<8x1xf32>
    %55 = vector.broadcast %54 : vector<8x1xf32> to vector<8x128xf32>
    %56 = arith.mulf %46, %55 : vector<8x128xf32>
    %c0_25 = arith.constant 0 : index
    %c0_26 = arith.constant 0 : index
    %57 = vector.load %arg10[%c0_25, %c0_26] : memref<1x128xf32, #tpu.memory_space<vmem>>, vector<1x128xf32>
    %58 = vector.broadcast %57 : vector<1x128xf32> to vector<8x128xf32>
    %59 = arith.mulf %56, %58 : vector<8x128xf32>
    %c0_27 = arith.constant 0 : index
    %c0_28 = arith.constant 0 : index
    %60 = vector.load %arg11[%c0_27, %c0_28] : memref<1x128xf32, #tpu.memory_space<vmem>>, vector<1x128xf32>
    %61 = vector.broadcast %60 : vector<1x128xf32> to vector<8x128xf32>
    %62 = arith.addf %59, %61 : vector<8x128xf32>
    %cst_29 = arith.constant 0.000000e+00 : f32
    %63 = vector.broadcast %cst_29 : f32 to vector<8x128xf32>
    %64 = arith.maximumf %62, %63 : vector<8x128xf32>
    %65 = arith.addf %64, %7 : vector<8x128xf32>
    %c0_30 = arith.constant 0 : index
    %c0_31 = arith.constant 0 : index
    %c0_32 = arith.constant 0 : index
    %66 = vector.load %arg12[%c0_30, %c0_31, %c0_32] : memref<1x8x128xf32, #tpu.memory_space<vmem>>, vector<1x8x128xf32>
    %67 = vector.shape_cast %66 : vector<1x8x128xf32> to vector<8x128xf32>
    %68 = vector.shape_cast %65 : vector<8x128xf32> to vector<1x8x128xf32>
    tpu.vector_store %arg12[%c0_30, %c0_31, %c0_32], %68 {strides = array<i32>} : memref<1x8x128xf32, #tpu.memory_space<vmem>>, vector<1x8x128xf32>,
    return
  }
  func.func @transform_0(%arg0: i32, %arg1: i32, %arg2: memref<2xi32, #tpu.memory_space<smem>>) -> (i32, i32, i32) {
    %c0_i32 = arith.constant 0 : i32
    %c0_i32_0 = arith.constant 0 : i32
    %c0_i32_1 = arith.constant 0 : i32
    return %arg0, %c0_i32, %c0_i32_0 : i32, i32, i32
  }
  func.func @transform_1(%arg0: i32, %arg1: i32, %arg2: memref<2xi32, #tpu.memory_space<smem>>) -> (i32, i32, i32) {
    %c0_i32 = arith.constant 0 : i32
    %c0_i32_0 = arith.constant 0 : i32
    %c0_i32_1 = arith.constant 0 : i32
    %c0_i32_2 = arith.constant 0 : i32
    return %c0_i32, %c0_i32_0, %c0_i32_1 : i32, i32, i32
  }
  func.func @transform_2(%arg0: i32, %arg1: i32, %arg2: memref<2xi32, #tpu.memory_space<smem>>) -> (i32, i32, i32) {
    %c0_i32 = arith.constant 0 : i32
    %c0_i32_0 = arith.constant 0 : i32
    %c0_i32_1 = arith.constant 0 : i32
    return %arg0, %c0_i32, %c0_i32_0 : i32, i32, i32
  }
  func.func @transform_3(%arg0: i32, %arg1: i32, %arg2: memref<2xi32, #tpu.memory_space<smem>>) -> (i32, i32) {
    %c0_i32 = arith.constant 0 : i32
    %c0_i32_0 = arith.constant 0 : i32
    return %arg1, %c0_i32 : i32, i32
  }
  func.func @transform_4(%arg0: i32, %arg1: i32, %arg2: memref<2xi32, #tpu.memory_space<smem>>) -> (i32, i32) {
    %c0_i32 = arith.constant 0 : i32
    %c0_i32_0 = arith.constant 0 : i32
    %c0_i32_1 = arith.constant 0 : i32
    return %c0_i32, %c0_i32_0 : i32, i32
  }
  func.func @transform_5(%arg0: i32, %arg1: i32, %arg2: memref<2xi32, #tpu.memory_space<smem>>) -> (i32, i32) {
    %c0_i32 = arith.constant 0 : i32
    %c0_i32_0 = arith.constant 0 : i32
    %c0_i32_1 = arith.constant 0 : i32
    return %c0_i32, %c0_i32_0 : i32, i32
  }
  func.func @transform_6(%arg0: i32, %arg1: i32, %arg2: memref<2xi32, #tpu.memory_space<smem>>) -> (i32, i32) {
    %c0_i32 = arith.constant 0 : i32
    %c0_i32_0 = arith.constant 0 : i32
    %c0_i32_1 = arith.constant 0 : i32
    return %c0_i32, %c0_i32_0 : i32, i32
  }
  func.func @transform_7(%arg0: i32, %arg1: i32, %arg2: memref<2xi32, #tpu.memory_space<smem>>) -> (i32, i32) {
    %c0_i32 = arith.constant 0 : i32
    %c0_i32_0 = arith.constant 0 : i32
    %c0_i32_1 = arith.constant 0 : i32
    return %c0_i32, %c0_i32_0 : i32, i32
  }
  func.func @transform_8(%arg0: i32, %arg1: i32, %arg2: memref<2xi32, #tpu.memory_space<smem>>) -> (i32, i32) {
    %c0_i32 = arith.constant 0 : i32
    %c0_i32_0 = arith.constant 0 : i32
    %c0_i32_1 = arith.constant 0 : i32
    return %c0_i32, %c0_i32_0 : i32, i32
  }
  func.func @transform_9(%arg0: i32, %arg1: i32, %arg2: memref<2xi32, #tpu.memory_space<smem>>) -> (i32, i32, i32) {
    %c0_i32 = arith.constant 0 : i32
    %c0_i32_0 = arith.constant 0 : i32
    return %arg0, %arg1, %c0_i32 : i32, i32, i32
  }
}

module attributes {stable_mosaic.version = 11 : i64} {
  func.func @_rel_conv_kernel(%arg0: i32, %arg1: i32, %arg2: memref<2xi32, #tpu.memory_space<smem>>, %arg3: memref<1x32x128xf32, #tpu.memory_space<vmem>>, %arg4: memref<1x8x128xf32, #tpu.memory_space<vmem>>, %arg5: memref<1x1x128xf32, #tpu.memory_space<vmem>>, %arg6: memref<32x256xbf16, #tpu.memory_space<vmem>>, %arg7: memref<128x128xbf16, #tpu.memory_space<vmem>>, %arg8: memref<128x128xbf16, #tpu.memory_space<vmem>>, %arg9: memref<1x128xf32, #tpu.memory_space<vmem>>, %arg10: memref<1x128xf32, #tpu.memory_space<vmem>>, %arg11: memref<1x128xf32, #tpu.memory_space<vmem>>, %arg12: memref<1x32x128xf32, #tpu.memory_space<vmem>>, %arg13: memref<256x128xbf16, #tpu.memory_space<vmem>>) attributes {dimension_semantics = [#tpu.dimension_semantics<parallel>, #tpu.dimension_semantics<arbitrary>], iteration_bounds = array<i64: 2, 1>, scalar_prefetch = 1 : i64, scratch_operands = 1 : i64, tpu.core_type = #tpu.core_type<tc>, window_params = [{transform_indices = @transform_0, window_bounds = array<i64: 1, 32, 128>}, {transform_indices = @transform_1, window_bounds = array<i64: 1, 8, 128>}, {transform_indices = @transform_2, window_bounds = array<i64: 1, 1, 128>}, {transform_indices = @transform_3, window_bounds = array<i64: 32, 256>}, {pipeline_mode = #tpu.pipeline_mode<synchronous>, transform_indices = @transform_4, window_bounds = array<i64: 128, 128>}, {pipeline_mode = #tpu.pipeline_mode<synchronous>, transform_indices = @transform_5, window_bounds = array<i64: 128, 128>}, {pipeline_mode = #tpu.pipeline_mode<synchronous>, transform_indices = @transform_6, window_bounds = array<i64: 1, 128>}, {pipeline_mode = #tpu.pipeline_mode<synchronous>, transform_indices = @transform_7, window_bounds = array<i64: 1, 128>}, {pipeline_mode = #tpu.pipeline_mode<synchronous>, transform_indices = @transform_8, window_bounds = array<i64: 1, 128>}, {transform_indices = @transform_9, window_bounds = array<i64: 1, 32, 128>}]} {
    %c0_i32 = arith.constant 0 : i32
    %0 = arith.cmpi eq, %arg1, %c0_i32 : i32
    %1 = arith.extui %0 : i1 to i32
    %c0_i32_0 = arith.constant 0 : i32
    %2 = arith.cmpi ne, %1, %c0_i32_0 : i32
    scf.if %2 {
      %c0_33 = arith.constant 0 : index
      %c0_34 = arith.constant 0 : index
      %c0_35 = arith.constant 0 : index
      %69 = vector.load %arg3[%c0_33, %c0_34, %c0_35] : memref<1x32x128xf32, #tpu.memory_space<vmem>>, vector<1x32x128xf32>
      %70 = vector.shape_cast %69 : vector<1x32x128xf32> to vector<32x128xf32>
      %c0_36 = arith.constant 0 : index
      %c0_37 = arith.constant 0 : index
      %c0_38 = arith.constant 0 : index
      %71 = vector.load %arg4[%c0_36, %c0_37, %c0_38] : memref<1x8x128xf32, #tpu.memory_space<vmem>>, vector<1x8x128xf32>
      %72 = vector.shape_cast %71 : vector<1x8x128xf32> to vector<8x128xf32>
      %73 = vector.shape_cast %72 : vector<8x128xf32> to vector<8x1x128xf32>
      %74 = vector.shape_cast %70 : vector<32x128xf32> to vector<1x32x128xf32>
      %75 = vector.broadcast %73 : vector<8x1x128xf32> to vector<8x32x128xf32>
      %76 = vector.broadcast %74 : vector<1x32x128xf32> to vector<8x32x128xf32>
      %77 = arith.mulf %75, %76 : vector<8x32x128xf32>
      %78 = vector.shape_cast %77 : vector<8x32x128xf32> to vector<256x128xf32>
      %79 = arith.truncf %78 : vector<256x128xf32> to vector<256x128xbf16>
      %c0_39 = arith.constant 0 : index
      %c0_40 = arith.constant 0 : index
      %80 = vector.load %arg13[%c0_39, %c0_40] : memref<256x128xbf16, #tpu.memory_space<vmem>>, vector<256x128xbf16>
      tpu.vector_store %arg13[%c0_39, %c0_40], %79 {strides = array<i32>} : memref<256x128xbf16, #tpu.memory_space<vmem>>, vector<256x128xbf16>,
    } else {
    }
    %c32_i32 = arith.constant 32 : i32
    %3 = arith.muli %arg1, %c32_i32 : i32
    %4 = tpu.assume_multiple %3, 32 : i32
    %c0 = arith.constant 0 : index
    %5 = arith.index_cast %4 : i32 to index
    %c0_1 = arith.constant 0 : index
    %6 = vector.load %arg3[%c0, %5, %c0_1] : memref<1x32x128xf32, #tpu.memory_space<vmem>>, vector<1x32x128xf32>
    %7 = vector.shape_cast %6 : vector<1x32x128xf32> to vector<32x128xf32>
    %c0_2 = arith.constant 0 : index
    %c0_3 = arith.constant 0 : index
    %8 = vector.load %arg6[%c0_2, %c0_3] : memref<32x256xbf16, #tpu.memory_space<vmem>>, vector<32x256xbf16>
    %c0_4 = arith.constant 0 : index
    %c0_5 = arith.constant 0 : index
    %9 = vector.load %arg13[%c0_4, %c0_5] : memref<256x128xbf16, #tpu.memory_space<vmem>>, vector<256x128xbf16>
    %cst = arith.constant dense<0.000000e+00> : vector<32x128xf32>
    %10 = tpu.matmul %8, %9, %cst {dimension_numbers = #tpu.dot_dimension_numbers<[1], [0], [0], [1], [0, 0, 1, 1], [], []>} : vector<32x256xbf16>, vector<256x128xbf16>, vector<32x128xf32> -> vector<32x128xf32>
    %11 = arith.index_cast %arg0 : i32 to index
    %12 = memref.load %arg2[%11] : memref<2xi32, #tpu.memory_space<smem>>
    %13 = arith.subi %12, %4 : i32
    %14 = tpu.iota {dimensions = array<i32: 0>} : vector<32x128xi32>
    %15 = vector.broadcast %13 : i32 to vector<32x128xi32>
    %16 = arith.cmpi eq, %14, %15 : vector<32x128xi32>
    %c0_6 = arith.constant 0 : index
    %c0_7 = arith.constant 0 : index
    %c0_8 = arith.constant 0 : index
    %17 = vector.load %arg5[%c0_6, %c0_7, %c0_8] : memref<1x1x128xf32, #tpu.memory_space<vmem>>, vector<1x1x128xf32>
    %18 = vector.shape_cast %17 : vector<1x1x128xf32> to vector<1x128xf32>
    %cst_9 = arith.constant 0.000000e+00 : f32
    %19 = vector.shape_cast %18 : vector<1x128xf32> to vector<1x128xf32>
    %20 = vector.broadcast %19 : vector<1x128xf32> to vector<32x128xf32>
    %21 = vector.broadcast %cst_9 : f32 to vector<32x128xf32>
    %22 = arith.select %16, %20, %21 : vector<32x128xi1>, vector<32x128xf32>
    %23 = arith.addf %10, %22 : vector<32x128xf32>
    %24 = arith.truncf %7 : vector<32x128xf32> to vector<32x128xbf16>
    %c0_10 = arith.constant 0 : index
    %c0_11 = arith.constant 0 : index
    %25 = vector.load %arg7[%c0_10, %c0_11] : memref<128x128xbf16, #tpu.memory_space<vmem>>, vector<128x128xbf16>
    %cst_12 = arith.constant dense<0.000000e+00> : vector<32x128xf32>
    %26 = tpu.matmul %24, %25, %cst_12 {dimension_numbers = #tpu.dot_dimension_numbers<[1], [0], [0], [1], [0, 0, 1, 1], [], []>} : vector<32x128xbf16>, vector<128x128xbf16>, vector<32x128xf32> -> vector<32x128xf32>
    %27 = arith.truncf %23 : vector<32x128xf32> to vector<32x128xbf16>
    %c0_13 = arith.constant 0 : index
    %c0_14 = arith.constant 0 : index
    %28 = vector.load %arg8[%c0_13, %c0_14] : memref<128x128xbf16, #tpu.memory_space<vmem>>, vector<128x128xbf16>
    %cst_15 = arith.constant dense<0.000000e+00> : vector<32x128xf32>
    %29 = tpu.matmul %27, %28, %cst_15 {dimension_numbers = #tpu.dot_dimension_numbers<[1], [0], [0], [1], [0, 0, 1, 1], [], []>} : vector<32x128xbf16>, vector<128x128xbf16>, vector<32x128xf32> -> vector<32x128xf32>
    %30 = arith.addf %26, %29 : vector<32x128xf32>
    %c0_16 = arith.constant 0 : index
    %c0_17 = arith.constant 0 : index
    %31 = vector.load %arg9[%c0_16, %c0_17] : memref<1x128xf32, #tpu.memory_space<vmem>>, vector<1x128xf32>
    %32 = vector.broadcast %31 : vector<1x128xf32> to vector<32x128xf32>
    %33 = arith.addf %30, %32 : vector<32x128xf32>
    %34 = tpu.iota {dimensions = array<i32: 1>} : vector<32x128xi32>
    %c64_i32 = arith.constant 64 : i32
    %35 = vector.broadcast %c64_i32 : i32 to vector<32x128xi32>
    %36 = arith.cmpi slt, %34, %35 : vector<32x128xi32>
    %cst_18 = arith.constant 0.000000e+00 : f32
    %37 = vector.broadcast %cst_18 : f32 to vector<32x128xf32>
    %38 = arith.select %36, %33, %37 : vector<32x128xi1>, vector<32x128xf32>
    %cst_19 = arith.constant dense<0.000000e+00> : vector<32xf32>
    %39 = vector.multi_reduction <add>, %38, %cst_19 [1] : vector<32x128xf32> to vector<32xf32>
    %40 = vector.shape_cast %39 : vector<32xf32> to vector<32x1xf32>
    %cst_20 = arith.constant 1.562500e-02 : f32
    %41 = vector.broadcast %cst_20 : f32 to vector<32x1xf32>
    %42 = arith.mulf %40, %41 : vector<32x1xf32>
    %43 = vector.broadcast %42 : vector<32x1xf32> to vector<32x128xf32>
    %44 = arith.subf %38, %43 : vector<32x128xf32>
    %cst_21 = arith.constant 0.000000e+00 : f32
    %45 = vector.broadcast %cst_21 : f32 to vector<32x128xf32>
    %46 = arith.select %36, %44, %45 : vector<32x128xi1>, vector<32x128xf32>
    %47 = arith.mulf %46, %46 : vector<32x128xf32>
    %cst_22 = arith.constant dense<0.000000e+00> : vector<32xf32>
    %48 = vector.multi_reduction <add>, %47, %cst_22 [1] : vector<32x128xf32> to vector<32xf32>
    %49 = vector.shape_cast %48 : vector<32xf32> to vector<32x1xf32>
    %cst_23 = arith.constant 1.562500e-02 : f32
    %50 = vector.broadcast %cst_23 : f32 to vector<32x1xf32>
    %51 = arith.mulf %49, %50 : vector<32x1xf32>
    %cst_24 = arith.constant 9.99999974E-6 : f32
    %52 = vector.broadcast %cst_24 : f32 to vector<32x1xf32>
    %53 = arith.addf %51, %52 : vector<32x1xf32>
    %54 = math.rsqrt %53 : vector<32x1xf32>
    %55 = vector.broadcast %54 : vector<32x1xf32> to vector<32x128xf32>
    %56 = arith.mulf %46, %55 : vector<32x128xf32>
    %c0_25 = arith.constant 0 : index
    %c0_26 = arith.constant 0 : index
    %57 = vector.load %arg10[%c0_25, %c0_26] : memref<1x128xf32, #tpu.memory_space<vmem>>, vector<1x128xf32>
    %58 = vector.broadcast %57 : vector<1x128xf32> to vector<32x128xf32>
    %59 = arith.mulf %56, %58 : vector<32x128xf32>
    %c0_27 = arith.constant 0 : index
    %c0_28 = arith.constant 0 : index
    %60 = vector.load %arg11[%c0_27, %c0_28] : memref<1x128xf32, #tpu.memory_space<vmem>>, vector<1x128xf32>
    %61 = vector.broadcast %60 : vector<1x128xf32> to vector<32x128xf32>
    %62 = arith.addf %59, %61 : vector<32x128xf32>
    %cst_29 = arith.constant 0.000000e+00 : f32
    %63 = vector.broadcast %cst_29 : f32 to vector<32x128xf32>
    %64 = arith.maximumf %62, %63 : vector<32x128xf32>
    %65 = arith.addf %64, %7 : vector<32x128xf32>
    %c0_30 = arith.constant 0 : index
    %c0_31 = arith.constant 0 : index
    %c0_32 = arith.constant 0 : index
    %66 = vector.load %arg12[%c0_30, %c0_31, %c0_32] : memref<1x32x128xf32, #tpu.memory_space<vmem>>, vector<1x32x128xf32>
    %67 = vector.shape_cast %66 : vector<1x32x128xf32> to vector<32x128xf32>
    %68 = vector.shape_cast %65 : vector<32x128xf32> to vector<1x32x128xf32>
    tpu.vector_store %arg12[%c0_30, %c0_31, %c0_32], %68 {strides = array<i32>} : memref<1x32x128xf32, #tpu.memory_space<vmem>>, vector<1x32x128xf32>,
    return
  }
  func.func @transform_0(%arg0: i32, %arg1: i32, %arg2: memref<2xi32, #tpu.memory_space<smem>>) -> (i32, i32, i32) {
    %c0_i32 = arith.constant 0 : i32
    %c0_i32_0 = arith.constant 0 : i32
    %c0_i32_1 = arith.constant 0 : i32
    return %arg0, %c0_i32, %c0_i32_0 : i32, i32, i32
  }
  func.func @transform_1(%arg0: i32, %arg1: i32, %arg2: memref<2xi32, #tpu.memory_space<smem>>) -> (i32, i32, i32) {
    %c0_i32 = arith.constant 0 : i32
    %c0_i32_0 = arith.constant 0 : i32
    %c0_i32_1 = arith.constant 0 : i32
    return %arg0, %c0_i32, %c0_i32_0 : i32, i32, i32
  }
  func.func @transform_2(%arg0: i32, %arg1: i32, %arg2: memref<2xi32, #tpu.memory_space<smem>>) -> (i32, i32, i32) {
    %c0_i32 = arith.constant 0 : i32
    %c0_i32_0 = arith.constant 0 : i32
    %c0_i32_1 = arith.constant 0 : i32
    return %arg0, %c0_i32, %c0_i32_0 : i32, i32, i32
  }
  func.func @transform_3(%arg0: i32, %arg1: i32, %arg2: memref<2xi32, #tpu.memory_space<smem>>) -> (i32, i32) {
    %c0_i32 = arith.constant 0 : i32
    %c0_i32_0 = arith.constant 0 : i32
    return %arg1, %c0_i32 : i32, i32
  }
  func.func @transform_4(%arg0: i32, %arg1: i32, %arg2: memref<2xi32, #tpu.memory_space<smem>>) -> (i32, i32) {
    %c0_i32 = arith.constant 0 : i32
    %c0_i32_0 = arith.constant 0 : i32
    %c0_i32_1 = arith.constant 0 : i32
    return %c0_i32, %c0_i32_0 : i32, i32
  }
  func.func @transform_5(%arg0: i32, %arg1: i32, %arg2: memref<2xi32, #tpu.memory_space<smem>>) -> (i32, i32) {
    %c0_i32 = arith.constant 0 : i32
    %c0_i32_0 = arith.constant 0 : i32
    %c0_i32_1 = arith.constant 0 : i32
    return %c0_i32, %c0_i32_0 : i32, i32
  }
  func.func @transform_6(%arg0: i32, %arg1: i32, %arg2: memref<2xi32, #tpu.memory_space<smem>>) -> (i32, i32) {
    %c0_i32 = arith.constant 0 : i32
    %c0_i32_0 = arith.constant 0 : i32
    %c0_i32_1 = arith.constant 0 : i32
    return %c0_i32, %c0_i32_0 : i32, i32
  }
  func.func @transform_7(%arg0: i32, %arg1: i32, %arg2: memref<2xi32, #tpu.memory_space<smem>>) -> (i32, i32) {
    %c0_i32 = arith.constant 0 : i32
    %c0_i32_0 = arith.constant 0 : i32
    %c0_i32_1 = arith.constant 0 : i32
    return %c0_i32, %c0_i32_0 : i32, i32
  }
  func.func @transform_8(%arg0: i32, %arg1: i32, %arg2: memref<2xi32, #tpu.memory_space<smem>>) -> (i32, i32) {
    %c0_i32 = arith.constant 0 : i32
    %c0_i32_0 = arith.constant 0 : i32
    %c0_i32_1 = arith.constant 0 : i32
    return %c0_i32, %c0_i32_0 : i32, i32
  }
  func.func @transform_9(%arg0: i32, %arg1: i32, %arg2: memref<2xi32, #tpu.memory_space<smem>>) -> (i32, i32, i32) {
    %c0_i32 = arith.constant 0 : i32
    %c0_i32_0 = arith.constant 0 : i32
    return %arg0, %arg1, %c0_i32 : i32, i32, i32
  }
}

module attributes {stable_mosaic.version = 11 : i64} {
  func.func @_mlp_kernel(%arg0: i32, %arg1: memref<1x64x128xbf16, #tpu.memory_space<vmem>>, %arg2: memref<1x128x1xf32, #tpu.memory_space<vmem>>, %arg3: memref<128x64xbf16, #tpu.memory_space<vmem>>, %arg4: memref<128x1xf32, #tpu.memory_space<vmem>>, %arg5: memref<1x1xf32, #tpu.memory_space<smem>>, %arg6: memref<1x1x128xf32, #tpu.memory_space<vmem>>) attributes {dimension_semantics = [#tpu.dimension_semantics<parallel>], iteration_bounds = array<i64: 2>, scalar_prefetch = 0 : i64, scratch_operands = 0 : i64, tpu.core_type = #tpu.core_type<tc>, window_params = [{transform_indices = @transform_0, window_bounds = array<i64: 1, 64, 128>}, {transform_indices = @transform_1, window_bounds = array<i64: 1, 128, 1>}, {pipeline_mode = #tpu.pipeline_mode<synchronous>, transform_indices = @transform_2, window_bounds = array<i64: 128, 64>}, {pipeline_mode = #tpu.pipeline_mode<synchronous>, transform_indices = @transform_3, window_bounds = array<i64: 128, 1>}, {transform_indices = @transform_4, window_bounds = array<i64: 1, 1>}, {transform_indices = @transform_5, window_bounds = array<i64: 1, 1, 128>}]} {
    %c0 = arith.constant 0 : index
    %c0_0 = arith.constant 0 : index
    %0 = vector.load %arg3[%c0, %c0_0] : memref<128x64xbf16, #tpu.memory_space<vmem>>, vector<128x64xbf16>
    %c0_1 = arith.constant 0 : index
    %c0_2 = arith.constant 0 : index
    %c0_3 = arith.constant 0 : index
    %1 = vector.load %arg1[%c0_1, %c0_2, %c0_3] : memref<1x64x128xbf16, #tpu.memory_space<vmem>>, vector<1x64x128xbf16>
    %2 = vector.shape_cast %1 : vector<1x64x128xbf16> to vector<64x128xbf16>
    %cst = arith.constant dense<0.000000e+00> : vector<128x128xf32>
    %3 = tpu.matmul %0, %2, %cst {dimension_numbers = #tpu.dot_dimension_numbers<[1], [0], [0], [1], [0, 0, 1, 1], [], []>} : vector<128x64xbf16>, vector<64x128xbf16>, vector<128x128xf32> -> vector<128x128xf32>
    %c0_4 = arith.constant 0 : index
    %c0_5 = arith.constant 0 : index
    %c0_6 = arith.constant 0 : index
    %4 = vector.load %arg2[%c0_4, %c0_5, %c0_6] : memref<1x128x1xf32, #tpu.memory_space<vmem>>, vector<1x128x1xf32>
    %5 = vector.shape_cast %4 : vector<1x128x1xf32> to vector<128x1xf32>
    %6 = vector.broadcast %5 : vector<128x1xf32> to vector<128x128xf32>
    %7 = arith.addf %3, %6 : vector<128x128xf32>
    %cst_7 = arith.constant 0.000000e+00 : f32
    %8 = vector.broadcast %cst_7 : f32 to vector<128x128xf32>
    %9 = arith.maximumf %7, %8 : vector<128x128xf32>
    %c0_8 = arith.constant 0 : index
    %c0_9 = arith.constant 0 : index
    %10 = vector.load %arg4[%c0_8, %c0_9] : memref<128x1xf32, #tpu.memory_space<vmem>>, vector<128x1xf32>
    %11 = vector.broadcast %10 : vector<128x1xf32> to vector<128x128xf32>
    %12 = arith.mulf %11, %9 : vector<128x128xf32>
    %cst_10 = arith.constant dense<0.000000e+00> : vector<128xf32>
    %13 = vector.multi_reduction <add>, %12, %cst_10 [0] : vector<128x128xf32> to vector<128xf32>
    %14 = vector.shape_cast %13 : vector<128xf32> to vector<1x128xf32>
    %c0_11 = arith.constant 0 : index
    %c0_12 = arith.constant 0 : index
    %15 = memref.load %arg5[%c0_11, %c0_12] : memref<1x1xf32, #tpu.memory_space<smem>>
    %16 = vector.broadcast %15 : f32 to vector<1x128xf32>
    %17 = arith.addf %14, %16 : vector<1x128xf32>
    %c0_13 = arith.constant 0 : index
    %c0_14 = arith.constant 0 : index
    %c0_15 = arith.constant 0 : index
    %18 = vector.load %arg6[%c0_13, %c0_14, %c0_15] : memref<1x1x128xf32, #tpu.memory_space<vmem>>, vector<1x1x128xf32>
    %19 = vector.shape_cast %18 : vector<1x1x128xf32> to vector<1x128xf32>
    %20 = vector.shape_cast %17 : vector<1x128xf32> to vector<1x1x128xf32>
    tpu.vector_store %arg6[%c0_13, %c0_14, %c0_15], %20 {strides = array<i32>} : memref<1x1x128xf32, #tpu.memory_space<vmem>>, vector<1x1x128xf32>,
    return
  }
  func.func @transform_0(%arg0: i32) -> (i32, i32, i32) {
    %c0_i32 = arith.constant 0 : i32
    %c0_i32_0 = arith.constant 0 : i32
    %c0_i32_1 = arith.constant 0 : i32
    return %arg0, %c0_i32, %c0_i32_0 : i32, i32, i32
  }
  func.func @transform_1(%arg0: i32) -> (i32, i32, i32) {
    %c0_i32 = arith.constant 0 : i32
    %c0_i32_0 = arith.constant 0 : i32
    %c0_i32_1 = arith.constant 0 : i32
    return %arg0, %c0_i32, %c0_i32_0 : i32, i32, i32
  }
  func.func @transform_2(%arg0: i32) -> (i32, i32) {
    %c0_i32 = arith.constant 0 : i32
    %c0_i32_0 = arith.constant 0 : i32
    %c0_i32_1 = arith.constant 0 : i32
    return %c0_i32, %c0_i32_0 : i32, i32
  }
  func.func @transform_3(%arg0: i32) -> (i32, i32) {
    %c0_i32 = arith.constant 0 : i32
    %c0_i32_0 = arith.constant 0 : i32
    %c0_i32_1 = arith.constant 0 : i32
    return %c0_i32, %c0_i32_0 : i32, i32
  }
  func.func @transform_4(%arg0: i32) -> (i32, i32) {
    %c0_i32 = arith.constant 0 : i32
    %c0_i32_0 = arith.constant 0 : i32
    %c0_i32_1 = arith.constant 0 : i32
    return %c0_i32, %c0_i32_0 : i32, i32
  }
  func.func @transform_5(%arg0: i32) -> (i32, i32, i32) {
    %c0_i32 = arith.constant 0 : i32
    %c0_i32_0 = arith.constant 0 : i32
    %c0_i32_1 = arith.constant 0 : i32
    return %arg0, %c0_i32, %c0_i32_0 : i32, i32, i32
  }
}

</mosaic_0001>

<bundles_post_ra>
// kernel: ultra_forward.9
= control target key start
LH: loop header
LB: loop body
LE: loop exit
PB: predicated region body
PF: predicated region fallthrough
CT: control target
= control target key end

     0   :  { %s1217_s0 = inlined_call_operand.vmem [shape: bf16[2,64,128], index: 0, kind: input, shape index: {}]   ;;  %s1218_s1 = inlined_call_operand.vmem [shape: f32[2,128,1], index: 1, kind: input, shape index: {}]   ;;  %s1219_s2 = inlined_call_operand.vmem [shape: bf16[128,64], index: 2, kind: input, shape index: {}]   ;;  %s1220_s3 = inlined_call_operand.vmem [shape: f32[128,1], index: 3, kind: input, shape index: {}]   ;;  %s1221_s4 = inlined_call_operand.<no memory space> [shape: f32[1,1], index: 4, kind: input, shape index: {}]   ;;  %s1222_s5 = inlined_call_operand.hbm [shape: f32[2,1,128], index: 5, kind: output, shape index: {}]  }
   0x1   :  { %10 = sst [smem:[#allocation2]] %s1221_s4 }
   0x2   :  { %11 = vsyncpa [#allocation4], 0 }
   0x3   :  { %13 = vsyncpa [#allocation4 + $0x1], 0  ;;  %s1013_s20 = smov 0   ;;  %s1015_s21 = smov 0  }
   0x4   :  { %s1017_s22 = smov 0   ;;  %s1019_s23 = smov 0  }
   0x5 LB: > { %s1034_s4 = sadd.s32 4294967295, %s976_s23   ;;  %s783_s24 = sadd.s32 4294967294, %s976_s23   ;;  %s976_s23 = sphi %s1019_s23, %s1228_s23   ;;  %s972_s22 = sphi %s1017_s22, %s1227_s22   ;;  %s968_s21 = sphi %s1015_s21, %s1226_s21   ;;  %s964_s20 = sphi %s1013_s20, %s1225_s20  }
   0x6   : > { %s1038_s25 = sadd.s32 1, %s976_s23   ;;  %s141_s26 = sadd.s32 1, %s972_s22 }
   0x7   : > { %s138_s27 = ssub.s32 %s976_s23, %s1038_s25  ;;  %p151_p0 = scmp.ne.s32.totalorder %s972_s22, %s968_s21 }
   0x8   : > { %p139_p1 = scmp.eq.s32.totalorder %s138_s27, 0  ;;  %p152_p2 = scmp.eq.s32.totalorder %s1034_s4, 1 }
   0x9   : > { %p157_p3 = scmp.ne.s32.totalorder %s968_s21, %s964_s20  ;;  %p158_p4 = scmp.eq.s32.totalorder %s783_s24, 1 }
   0xa   : > { %s1049_s28 = scalar_select %p139_p1, %s972_s22, %s141_s26  }
   0xb   : > { %p1051_p5 = por %p152_p2, %p151_p0  ;;  %p1055_p6 = por %p158_p4, %p157_p3 }
   0xc   : > { %p786_p7 = scmp.ge.s32.totalorder %s976_s23, 1  ;;  %p201_p8 = scmp.lt.s32.totalorder %s976_s23, 3 }
   0xe   : > { %p202_p9 = pnand %p786_p7, %p201_p8 }
   0xf   : > { %p233_p10 = scmp.lt.s32.totalorder (!%p202_p9), %s1034_s4, 1  ;;  %v978_v0 = vmov (!%p202_p9), 0   ;;  %v906_v1 = vld [vmem:[%s1219_s2] sm:$0xff] (!%p202_p9)   ;;  %vm428_vm0 = vcmask (!%p202_p9), 523264   ;;  %v567_v12 = vld [vmem:[%s1220_s3 + $0x8] sm:$0xff] (!%p202_p9)  ;;  %v568_v16 = vld [vmem:[%s1220_s3 + $0x10] sm:$0xff] (!%p202_p9) }
  0x10   : > { %205 = sbr.rel (%p202_p9) target bundleno = 323 (0x143), region = 40  ;;  %900 = vset.pattern.permute.xlu0 (!%p202_p9), %v978_v0  ;;  %901 = vset.pattern.permute.xlu1 (!%p202_p9), %v978_v0  ;;  %v907_v2 = vld [vmem:[%s1219_s2 + $0x20] sm:$0xff] (!%p202_p9)   ;;  %v908_v13 = vld [vmem:[%s1219_s2 + $0x8] sm:$0xff] (!%p202_p9)   ;;  %v910_v17 = vld [vmem:[%s1219_s2 + $0x10] sm:$0xff] (!%p202_p9)   ;;  %s231_s14 = sand.u32 (!%p202_p9), 1, %s968_s21  }
  0x11   : > { %836 = vmatprep.mubr.msk.bf16.mxu0 (!%p202_p9), %vm428_vm0, %v906_v1  ;;  %844 = vmatprep.mubr.msk.bf16.mxu1 (!%p202_p9), %vm428_vm0, %v907_v2  ;;  %v566_v11 = vld [vmem:[%s1220_s3] sm:$0xff] (!%p202_p9)  ;;  %v909_v14 = vld [vmem:[%s1219_s2 + $0x28] sm:$0xff] (!%p202_p9)   ;;  %v911_v18 = vld [vmem:[%s1219_s2 + $0x30] sm:$0xff] (!%p202_p9)   ;;  %s232_s16 = scalar_lea.vmem (!%p202_p9), [#allocation3], %s231_s14  ;;  %s704_s27 = scalar_lea.sflag (!%p202_p9), [#allocation4], %s231_s14 }
  0x12   : > { %v569_v20 = vld [vmem:[%s1220_s3 + $0x18] sm:$0xff] (!%p202_p9)  ;;  %v570_v24 = vld [vmem:[%s1220_s3 + $0x20] sm:$0xff] (!%p202_p9)  ;;  %v571_v26 = vld [vmem:[%s1220_s3 + $0x28] sm:$0xff] (!%p202_p9)  ;;  %s716_s17 = sshll.u32 (!%p202_p9), %s232_s16, 4  ;;  %s1177_s17 = int_to_ptr.vmem [resolvable:$true] %s716_s17 }
  0x13   : > { %v912_v21 = vld [vmem:[%s1219_s2 + $0x18] sm:$0xff] (!%p202_p9)   ;;  %v572_v28 = vld [vmem:[%s1220_s3 + $0x30] sm:$0xff] (!%p202_p9)  ;;  %v574_v32 = vld [vmem:[%s1220_s3 + $0x40] sm:$0xff] (!%p202_p9)  ;;  %s914_s6 = scalar_lea.vmem (!%p202_p9), %s1177_s17, 16 }
  0x14   : > { %v913_v22 = vld [vmem:[%s1219_s2 + $0x38] sm:$0xff] (!%p202_p9)   ;;  %v575_v34 = vld [vmem:[%s1220_s3 + $0x48] sm:$0xff] (!%p202_p9)  ;;  %v576_v36 = vld [vmem:[%s1220_s3 + $0x50] sm:$0xff] (!%p202_p9)  ;;  %p915_p11 = scmp.ne.s32.totalorder (!%p202_p9), %s1177_s17, %s914_s6 }
  0x15   : > { %v573_v30 = vld [vmem:[%s1220_s3 + $0x38] sm:$0xff] (!%p202_p9)  ;;  %v578_v40 = vld [vmem:[%s1220_s3 + $0x60] sm:$0xff] (!%p202_p9)  ;;  %v579_v42 = vld [vmem:[%s1220_s3 + $0x68] sm:$0xff] (!%p202_p9) }
  0x16   : > { %v577_v38 = vld [vmem:[%s1220_s3 + $0x58] sm:$0xff] (!%p202_p9)  ;;  %v580_v43 = vld [vmem:[%s1220_s3 + $0x70] sm:$0xff] (!%p202_p9)  ;;  %p916_p12 = pnand (!%p202_p9), %p915_p11, %p1051_p5 }
  0x17   : > { %s234_s8 = scalar_select %p233_p10, %s1034_s4, 1  ;;  %v581_v44 = vld [vmem:[%s1220_s3 + $0x78] sm:$0xff] }
  0x18   : > { %p917_p13 = pneg %p916_p12 }
  0x19   : > { %s814_s11 = sshll.u32 %s234_s8, 5  ;;  %s815_s12 = sshll.u32 %s234_s8, 7 }
  0x1a   : > { %s237_s15 = scalar_lea.vmem %s1217_s0, %s814_s11  ;;  %s1077_s18 = scalar_lea.vmem %s1218_s1, %s815_s12 }
  0x1b   : > { %v902_v3 = vld [vmem:[%s237_s15] sm:$0xff]   ;;  %v903_v4 = vld [vmem:[%s237_s15 + $0x8] sm:$0xff]   ;;  %v904_v5 = vld [vmem:[%s237_s15 + $0x10] sm:$0xff]  }
  0x1c   : > { %828 = vmatprep.subr.bf16.mxu0 %v902_v3  ;;  %852 = vmatprep.subr.bf16.mxu1 %v902_v3  ;;  %v268_v6 = vld [vmem:[%s1077_s18] sm:$0xff]  ;;  %v270_v7 = vld [vmem:[%s1077_s18 + $0x10] sm:$0xff]  ;;  %v269_v8 = vld [vmem:[%s1077_s18 + $0x8] sm:$0xff] }
  0x1d   : > { %829 = vmatpush3.bf16.msra.mxu0 %v902_v3  ;;  %856 = vmatpush3.bf16.msra.mxu1 %v902_v3  ;;  %v271_v9 = vld [vmem:[%s1077_s18 + $0x18] sm:$0xff]  ;;  %v272_v15 = vld [vmem:[%s1077_s18 + $0x20] sm:$0xff]  ;;  %v273_v19 = vld [vmem:[%s1077_s18 + $0x28] sm:$0xff] }
  0x1e   : > { %830 = vmatprep.subr.bf16.mxu0 %v903_v4  ;;  %853 = vmatprep.subr.bf16.mxu1 %v903_v4  ;;  %v905_v10 = vld [vmem:[%s237_s15 + $0x18] sm:$0xff]   ;;  %v274_v23 = vld [vmem:[%s1077_s18 + $0x30] sm:$0xff]  ;;  %v276_v27 = vld [vmem:[%s1077_s18 + $0x40] sm:$0xff]  ;;  %s811_s15 = sshll.u32 %s1034_s4, 4  ;;  %s979_s4 = smov [#allocation3]  }
  0x1f   : > { %286 = vperm.xlu0 %900, %v268_v6   ;;  %296 = vperm.xlu1 %901, %v270_v7   ;;  %v275_v25 = vld [vmem:[%s1077_s18 + $0x38] sm:$0xff]  ;;  %v277_v29 = vld [vmem:[%s1077_s18 + $0x48] sm:$0xff]  ;;  %v278_v31 = vld [vmem:[%s1077_s18 + $0x50] sm:$0xff]  ;;  %s1175_s26 = scalar_lea.hbm %s1222_s5, %s811_s15  ;;  %s918_s7 = sshll.u32 %s979_s4, 4  ;;  %s919_s7 = int_to_ptr.vmem [resolvable:$false] %s918_s7 }
  0x20   : > { %v279_v33 = vld [vmem:[%s1077_s18 + $0x58] sm:$0xff]  ;;  %v280_v35 = vld [vmem:[%s1077_s18 + $0x60] sm:$0xff]  ;;  %v281_v37 = vld [vmem:[%s1077_s18 + $0x68] sm:$0xff]  ;;  %s920_s8 = scalar_lea.vmem %s919_s7, 32  ;;  %p921_p0 = scmp.lt.s32.totalorder %s1177_s17, %s919_s7 }
  0x21   : > { %831 = vmatpush3.bf16.msra.mxu0 %v903_v4  ;;  %857 = vmatpush3.bf16.msra.mxu1 %v903_v4  ;;  %v282_v39 = vld [vmem:[%s1077_s18 + $0x70] sm:$0xff]  ;;  %v283_v41 = vld [vmem:[%s1077_s18 + $0x78] sm:$0xff]  ;;  %s699_s18 = sld [smem:[#allocation2]]  ;;  %p922_p1 = scmp.lt.s32.totalorder %s920_s8, %s914_s6 }
  0x22   : > { %832 = vmatprep.subr.bf16.mxu0 %v904_v5  ;;  %854 = vmatprep.subr.bf16.mxu1 %v904_v5 }
  0x23   : > { %291 = vperm.xlu0 %900, %v269_v8   ;;  %301 = vperm.xlu1 %901, %v271_v9   ;;  %p923_p2 = por %p922_p1, %p921_p0 }
  0x25   : > { %833 = vmatpush3.bf16.msra.mxu0 %v904_v5  ;;  %858 = vmatpush3.bf16.msra.mxu1 %v904_v5  ;;  %p924_p3 = pnand %p923_p2, %p917_p13 }
  0x26   : > { %834 = vmatprep.subr.bf16.mxu0 %v905_v10  ;;  %855 = vmatprep.subr.bf16.mxu1 %v905_v10 }
  0x27   : > { %584 = vperm.xlu0 %900, %v566_v11   ;;  %589 = vperm.xlu1 %901, %v567_v12  }
  0x29   : > { %835 = vmatpush3.bf16.msra.mxu0 %v905_v10  ;;  %859 = vmatpush3.bf16.msra.mxu1 %v905_v10 }
  0x2b   : > { %306 = vperm.xlu0 %900, %v272_v15   ;;  %594 = vperm.xlu1 %901, %v568_v16  }
  0x2c   : > { %837 = vmatmul.mubr.msk.bf16.vlgmr.msra.gmra.mrb[0].mxu0 %vm428_vm0, %v908_v13  ;;  %845 = vmatmul.mubr.msk.bf16.vlgmr.msra.gmra.mrb[0].mxu1 %vm428_vm0, %v909_v14 }
  0x2d   : > { %840 = vmatprep.mubr.msk.bf16.mxu0 %vm428_vm0, %v910_v17  ;;  %848 = vmatprep.mubr.msk.bf16.mxu1 %vm428_vm0, %v911_v18 }
  0x2f   : > { %311 = vperm.xlu0 %900, %v273_v19   ;;  %599 = vperm.xlu1 %901, %v569_v20  }
  0x33   : > { %316 = vperm.xlu0 %900, %v274_v23   ;;  %604 = vperm.xlu1 %901, %v570_v24  }
  0x34   : > { %841 = vmatmul.mubr.msk.bf16.gmra.mrb[4].mxu0 %vm428_vm0, %v912_v21  ;;  %849 = vmatmul.mubr.msk.bf16.gmra.mrb[4].mxu1 %vm428_vm0, %v913_v22 }
  0x37   : > { %321 = vperm.xlu0 %900, %v275_v25   ;;  %609 = vperm.xlu1 %901, %v571_v26  }
  0x3b   : > { %326 = vperm.xlu0 %900, %v276_v27   ;;  %614 = vperm.xlu1 %901, %v572_v28  }
  0x3f   : > { %331 = vperm.xlu0 %900, %v277_v29   ;;  %619 = vperm.xlu1 %901, %v573_v30  }
  0x43   : > { %336 = vperm.xlu0 %900, %v278_v31   ;;  %624 = vperm.xlu1 %901, %v574_v32  }
  0x47   : > { %341 = vperm.xlu0 %900, %v279_v33   ;;  %629 = vperm.xlu1 %901, %v575_v34  }
  0x4b   : > { %346 = vperm.xlu0 %900, %v280_v35   ;;  %634 = vperm.xlu1 %901, %v576_v36  }
  0x4f   : > { %351 = vperm.xlu0 %900, %v281_v37   ;;  %639 = vperm.xlu1 %901, %v577_v38  }
  0x53   : > { %356 = vperm.xlu0 %900, %v282_v39   ;;  %644 = vperm.xlu1 %901, %v578_v40  }
  0x57   : > { %361 = vperm.xlu0 %900, %v283_v41   ;;  %649 = vperm.xlu1 %901, %v579_v42  }
  0x5b   : > { %654 = vperm.xlu0 %900, %v580_v43   ;;  %659 = vperm.xlu1 %901, %v581_v44  }
  0x9e   : > { %v287_v45 = vpop.permute.xlu0 %286  ;;  %v297_v46 = vpop.permute.xlu1 %296 }
  0xa2   : > { %v292_v47 = vpop.permute.xlu0 %291  ;;  %v302_v48 = vpop.permute.xlu1 %301 }
  0xa6   : > { %v585_v49 = vpop.permute.xlu0 %584  ;;  %v590_v50 = vpop.permute.xlu1 %589 }
  0xaa   : > { %v307_v51 = vpop.permute.xlu0 %306  ;;  %v595_v52 = vpop.permute.xlu1 %594 }
  0xae   : > { %v312_v53 = vpop.permute.xlu0 %311  ;;  %v600_v54 = vpop.permute.xlu1 %599 }
  0xb2   : > { %v317_v55 = vpop.permute.xlu0 %316  ;;  %v605_v56 = vpop.permute.xlu1 %604 }
  0xb6   : > { %v322_v57 = vpop.permute.xlu0 %321  ;;  %v610_v58 = vpop.permute.xlu1 %609 }
  0xba   : > { %v327_v59 = vpop.permute.xlu0 %326  ;;  %v615_v60 = vpop.permute.xlu1 %614 }
  0xbe   : > { %v332_v61 = vpop.permute.xlu0 %331  ;;  %v620_v62 = vpop.permute.xlu1 %619 }
  0xc2   : > { %v337_v63 = vpop.permute.xlu0 %336  ;;  %v625_v0 = vpop.permute.xlu1 %624 }
  0xc6   : > { %v342_v1 = vpop.permute.xlu0 %341  ;;  %v1167_v2 = vpop.permute.xlu1 %629 }
  0xca   : > { %v347_v18 = vpop.permute.xlu0 %346  ;;  %v635_v19 = vpop.permute.xlu1 %634 }
  0xff   : > { %v838_v3 = vpop.f32.mrb[0].mxu0  ;;  %v846_v4 = vpop.f32.mrb[0].mxu1 }
 0x100   : > { %v487_v5 = vpop.f32.mrb[1].mxu0  ;;  %v519_v6 = vpop.f32.mrb[1].mxu1  ;;  %v496_v7 = vadd.f32 %v838_v3, %v297_v46 }
 0x101   : > { %v488_v8 = vadd.f32 %v487_v5, %v287_v45  ;;  %v839_v9 = vpop.f32.mrb[2].mxu0  ;;  %v847_v10 = vpop.f32.mrb[2].mxu1  ;;  %v520_v40 = vadd.f32 %v519_v6, %v327_v59 }
 0x102   : > { %v499_v11 = vadd.f32 %v839_v9, %v302_v48  ;;  %v490_v12 = vpop.f32.mrb[3].mxu0  ;;  %v522_v13 = vpop.f32.mrb[3].mxu1  ;;  %v552_v16 = vmax.f32 %v496_v7, 0.0  ;;  %v531_v3 = vadd.f32 %v847_v10, %v342_v1 }
 0x103   : > { %v550_v14 = vmax.f32 %v488_v8, 0.0  ;;  %v491_v15 = vadd.f32 %v490_v12, %v292_v47  ;;  %v352_v45 = vpop.permute.xlu0 %351  ;;  %v523_v46 = vadd.f32 %v522_v13, %v332_v61 }
 0x104   : > { %v553_v20 = vmax.f32 %v499_v11, 0.0  ;;  %v664_v27 = vmul.f32 %v595_v52, %v552_v16  ;;  %v558_v52 = vmax.f32 %v520_v40, 0.0  ;;  %v561_v11 = vmax.f32 %v531_v3, 0.0 }
 0x105   : > { %v551_v17 = vmax.f32 %v491_v15, 0.0  ;;  %v662_v21 = vmul.f32 %v585_v49, %v550_v14  ;;  %v559_v5 = vmax.f32 %v523_v46, 0.0 }
 0x106   : > { %v665_v33 = vmul.f32 %v600_v54, %v553_v20  ;;  %v670_v6 = vmul.f32 %v625_v0, %v558_v52 }
 0x107   : > { %v663_v22 = vmul.f32 %v590_v50, %v551_v17  ;;  %v842_v23 = vpop.f32.mrb[4].mxu0  ;;  %v850_v24 = vpop.f32.mrb[4].mxu1  ;;  %v671_v61 = vmul.f32 %v1167_v2, %v559_v5 }
 0x108   : > { %v503_v25 = vpop.f32.mrb[5].mxu0  ;;  %v535_v26 = vpop.f32.mrb[5].mxu1  ;;  %v512_v29 = vadd.f32 %v842_v23, %v317_v55 }
 0x109   : > { %v678_v28 = vadd.f32 %v663_v22, %v662_v21  ;;  %v504_v30 = vadd.f32 %v503_v25, %v307_v51  ;;  %v843_v31 = vpop.f32.mrb[6].mxu0  ;;  %v851_v32 = vpop.f32.mrb[6].mxu1  ;;  %v528_v51 = vadd.f32 %v846_v4, %v337_v63 }
 0x10a   : > { %v506_v34 = vpop.f32.mrb[7].mxu0  ;;  %v538_v35 = vpop.f32.mrb[7].mxu1  ;;  %v515_v38 = vadd.f32 %v843_v31, %v322_v57  ;;  %v556_v41 = vmax.f32 %v512_v29, 0.0 }
 0x10b   : > { %v679_v36 = vadd.f32 %v678_v28, %v664_v27  ;;  %v554_v37 = vmax.f32 %v504_v30, 0.0  ;;  %v507_v39 = vadd.f32 %v506_v34, %v312_v53  ;;  %v640_v50 = vpop.permute.xlu1 %639  ;;  %v357_v53 = vpop.permute.xlu0 %356  ;;  %v560_v59 = vmax.f32 %v528_v51, 0.0 }
 0x10c   : > { %v557_v48 = vmax.f32 %v515_v38, 0.0  ;;  %v668_v54 = vmul.f32 %v615_v60, %v556_v41  ;;  %v544_v63 = vadd.f32 %v850_v24, %v357_v53  ;;  %v673_v1 = vmul.f32 %v640_v50, %v561_v11 }
 0x10d   : > { %v666_v42 = vmul.f32 %v605_v56, %v554_v37  ;;  %v680_v43 = vadd.f32 %v679_v36, %v665_v33  ;;  %v555_v44 = vmax.f32 %v507_v39, 0.0  ;;  %v536_v56 = vadd.f32 %v535_v26, %v347_v18 }
 0x10e   : > { %v669_v7 = vmul.f32 %v620_v62, %v557_v48  ;;  %v672_v13 = vmul.f32 %v635_v19, %v560_v59  ;;  %v564_v17 = vmax.f32 %v544_v63, 0.0  ;;  %v700_v33 = vstv %s699_s18 }
 0x10f   : > { %v681_v47 = vadd.f32 %v680_v43, %v666_v42  ;;  %v667_v49 = vmul.f32 %v610_v58, %v555_v44  ;;  %v645_v9 = vpop.permute.xlu1 %644  ;;  %v539_v58 = vadd.f32 %v538_v35, %v352_v45  ;;  %v562_v4 = vmax.f32 %v536_v56, 0.0  ;;  %v362_v14 = vpop.permute.xlu0 %361 }
 0x110   : > { %v547_v10 = vadd.f32 %v851_v32, %v362_v14 }
 0x111   : > { %v682_v55 = vadd.f32 %v681_v47, %v667_v49  ;;  %v563_v62 = vmax.f32 %v539_v58, 0.0  ;;  %v674_v0 = vmul.f32 %v645_v9, %v562_v4 }
 0x112   : > { %v565_v20 = vmax.f32 %v547_v10, 0.0 }
 0x113   : > { %v683_v57 = vadd.f32 %v682_v55, %v668_v54  ;;  %v650_v16 = vpop.permute.xlu1 %649  ;;  %v655_v2 = vpop.permute.xlu0 %654 }
 0x114   : > { %v675_v21 = vmul.f32 %v650_v16, %v563_v62  ;;  %v676_v23 = vmul.f32 %v655_v2, %v564_v17 }
 0x115   : > { %v684_v8 = vadd.f32 %v683_v57, %v669_v7 }
 0x117   : > { %v685_v12 = vadd.f32 %v684_v8, %v670_v6  ;;  %v660_v24 = vpop.permute.xlu1 %659 }
 0x118   : > { %v677_v25 = vmul.f32 %v660_v24, %v565_v20 }
 0x119   : > { %v686_v60 = vadd.f32 %v685_v12, %v671_v61 }
 0x11b   : > { %v687_v15 = vadd.f32 %v686_v60, %v672_v13 }
 0x11d   : > { %v688_v18 = vadd.f32 %v687_v15, %v673_v1 }
 0x11f   : > { %v689_v22 = vadd.f32 %v688_v18, %v674_v0 }
 0x121   : > { %v690_v19 = vadd.f32 %v689_v22, %v675_v21 }
 0x123   : > { %v691_v26 = vadd.f32 %v690_v19, %v676_v23 }
 0x125   : > { %v692_v27 = vadd.f32 %v691_v26, %v677_v25 }
 0x127   : > { %v693_v28 = vrot.slane %v692_v27, 4 }
 0x129   : > { %v694_v29 = vadd.f32 %v693_v28, %v692_v27 }
 0x12b   : > { %v695_v30 = vrot.slane %v694_v29, 2 }
 0x12d   : > { %v696_v31 = vadd.f32 %v695_v30, %v694_v29 }
 0x12f   : > { %v697_v32 = vrot.slane %v696_v31, 1 }
 0x131   : > { %v698_v34 = vadd.f32 %v697_v32, %v696_v31 }
 0x133   : > { %v701_v35 = vadd.f32 %v700_v33, %v698_v34 }
 0x135   : > { %702 = vst [vmem:[%s232_s16] sm:$0x1] %v701_v35 }
 0x136   : > { %927 = shalt.err (!%p924_p3)
}
 0x137   : > { %s928_s9 = scalar_lea.hbm %s1175_s26, 16  ;;  %s932_s12 = scalar_lea.hbm %s1222_s5, 32 }
 0x138   : > { %p929_p4 = scmp.ne.s32.totalorder %s1175_s26, %s928_s9  ;;  %p933_p9 = scmp.lt.u32.totalorder %s1175_s26, %s1222_s5 }
 0x139   : > { %p934_p10 = scmp.lt.u32.totalorder %s932_s12, %s928_s9  ;;  %p936_p12 = scmp.lt.u32.totalorder %s928_s9, %s1175_s26 }
 0x13a   : > { %p930_p7 = pnand %p929_p4, %p1051_p5 }
 0x13b   : > { %p935_p11 = por %p934_p10, %p933_p9 }
 0x13c   : > { %p931_p8 = pneg %p930_p7 }
 0x13d   : > { %p937_p13 = por %p936_p12, %p935_p11 }
 0x13f   : > { %p938_p0 = pnand %p937_p13, %p931_p8 }
 0x141   : > { %941 = shalt.err (!%p938_p0)
}
 0x142   : > { %860 = dma.vmem_to_hbm [thread:$0]  (%p1051_p5), %s1177_s17, 16, %s1175_s26, %s704_s27  }
 0x143 PF: > { %p866_p1 = scmp.ge.s32.totalorder %s976_s23, 2  ;;  %s728_s14 = sand.u32 1, %s964_s20  }
 0x144   : > { %s729_s15 = scalar_lea.sflag [#allocation4], %s728_s14 }
 0x145   : > { %p863_p2 = pnand %p866_p1, %p1055_p6 }
 0x147   : > { %959 = dma.done.wait (!%p863_p2), %s729_s15, 16  }
 0x148   : > { %961 = vsyncadd (!%p863_p2), %s729_s15, 4294967280  ;;  %p16_p3 = scmp.ge.s32.totalorder %s1038_s25, 4   ;;  %s1225_s20 = smov %s968_s21 }
 0x149   : > { %s1226_s21 = smov %s972_s22  ;;  %s1227_s22 = smov %s1049_s28 }
 0x14a   : > { %s1228_s23 = smov %s1038_s25  ;;  %18 = sbr.rel (!%p16_p3) target bundleno = 5 (0x5), region = 78 }
 0x151   :  { %733 = vsyncpa [#allocation4], 1 }
 0x152   :  { %735 = vsyncpa [#allocation4 + $0x1], 1 }

// kernel: ultra_forward.5
= control target key start
LH: loop header
LB: loop body
LE: loop exit
PB: predicated region body
PF: predicated region fallthrough
CT: control target
= control target key end

     0   :  { %s1326_s0 = inlined_call_operand.vmem [shape: s32[2], index: 0, kind: input, shape index: {}]   ;;  %s1327_s1 = inlined_call_operand.vmem [shape: f32[2,8,128], index: 1, kind: input, shape index: {}]   ;;  %s1328_s2 = inlined_call_operand.vmem [shape: f32[1,8,128], index: 2, kind: input, shape index: {}]   ;;  %s1329_s3 = inlined_call_operand.vmem [shape: f32[2,1,128], index: 3, kind: input, shape index: {}]   ;;  %s1330_s4 = inlined_call_operand.vmem [shape: bf16[8,64], index: 4, kind: input, shape index: {}]   ;;  %s1331_s5 = inlined_call_operand.vmem [shape: bf16[128,128], index: 5, kind: input, shape index: {}]   ;;  %s1332_s6 = inlined_call_operand.vmem [shape: bf16[128,128], index: 6, kind: input, shape index: {}]   ;;  %s1333_s7 = inlined_call_operand.vmem [shape: f32[1,128], index: 7, kind: input, shape index: {}]   ;;  %s1334_s8 = inlined_call_operand.vmem [shape: f32[1,128], index: 8, kind: input, shape index: {}]   ;;  %s1335_s9 = inlined_call_operand.vmem [shape: f32[1,128], index: 9, kind: input, shape index: {}]   ;;  %s1336_s10 = inlined_call_operand.vmem [shape: f32[2,8,128], index: 10, kind: output, shape index: {}]  }
   0x1   :  { %s15_s15 = sshll.u32 %s1326_s0, 4  ;;  %s16_s15 = int_to_ptr.vmem [resolvable:$true] %s15_s15 }
   0x2   :  { %s1069_s16 = scalar_lea.vmem %s16_s15, 16  ;;  %p1074_p1 = scmp.lt.s32.totalorder %s16_s15, %s16_s15 }
   0x3   :  { %p1070_p0 = scmp.ne.s32.totalorder %s16_s15, %s1069_s16  ;;  %p1075_p2 = scmp.lt.s32.totalorder %s1069_s16, %s1069_s16 }
   0x5   :  { %p1076_p3 = por %p1075_p2, %p1074_p1 }
   0x7   :  { %p1077_p4 = pnand %p1076_p3, %p1070_p0 }
   0x9   :  { %1080 = shalt.err (!%p1077_p4)  }
   0xa   :  { %s1107_s17 = smov [#allocation4]  }
   0xb   :  { %18 = dma.vmem_to_smem %s16_s15, 16, %s1107_s17, [#allocation3] }
   0xc   :  { %1093 = dma.done.wait [#allocation3], 16 }
   0xd   :  { %1094 = vsyncadd [#allocation3], 4294967280 }
   0xe   :  { %20 = sfence }
   0xf   :  { %s1169_s18 = smov 0   ;;  %s1171_s19 = smov 0  }
  0x10   :  { %s1173_s20 = smov 0  }
  0x11 LB: > { %s38_s0 = sadd.s32 1, %s1101_s19  ;;  %p921_p5 = scmp.ge.s32.totalorder %s1105_s20, 1  ;;  %s1105_s20 = sphi %s1173_s20, %s26_s20   ;;  %s1101_s19 = sphi %s1171_s19, %s1340_s19   ;;  %s1097_s18 = sphi %s1169_s18, %s1339_s18  }
  0x12   : > { %p40_p6 = scmp.ge.s32.totalorder %s38_s0, 2  ;;  %p324_p7 = scmp.lt.s32.totalorder %s1105_s20, 3 }
  0x14   : > { %s1342_s0 = smov (%p40_p6, %s38_s0), 0  ;;  %p325_p8 = pnand %p921_p5, %p324_p7 }
  0x15   : > { %p368_p9 = scmp.lt.s32.totalorder (!%p325_p8), %s1097_s18, 1  ;;  %v398_v0 = vlaneseq (!%p325_p8)  ;;  %v1108_v1 = vmov (!%p325_p8), 0.0   ;;  %v392_v2 = vld [vmem:[%s1328_s2] sm:$0xff] (!%p325_p8)  ;;  %v1109_v3 = vmov (!%p325_p8), 1966171168   ;;  %vm1110_vm0 = vmmov (!%p325_p8), 0  }
  0x16   : > { %328 = sbr.rel (%p325_p8) target bundleno = 805 (0x325), region = 56  ;;  %970 = vmatprep.subr.bf16.mxu0 (!%p325_p8), %v1108_v1  ;;  %v396_v4 = vunpack.c.l.s4 (!%p325_p8), %v1109_v3  ;;  %978 = vmatprep.mubr.msk.bf16.mxu0 (!%p325_p8), %vm1110_vm0, %v1108_v1  ;;  %v394_v6 = vcombine.high (!%p325_p8), %v392_v2, %v392_v2  ;;  %v1052_v8 = vld [vmem:[%s1332_s6] sm:$0xff] (!%p325_p8)   ;;  %s1202_s26 = sld [smem:[#allocation4 + %s1097_s18]] (!%p325_p8)  ;;  %v1054_v9 = vld [vmem:[%s1332_s6 + $0x8] sm:$0xff] (!%p325_p8)   ;;  %v1056_v17 = vld [vmem:[%s1332_s6 + $0x10] sm:$0xff] (!%p325_p8)   ;;  %vm521_vm2 = vcmask (!%p325_p8), 523264  }
  0x17   : > { %v399_v5 = vshrl.u32 (!%p325_p8), %v398_v0, 7  ;;  %982 = vmatprep.subr.bf16.mxu1 (!%p325_p8), %v1108_v1  ;;  %998 = vmatprep.mubr.msk.bf16.mxu1 (!%p325_p8), %vm1110_vm0, %v1108_v1  ;;  %v1058_v29 = vld [vmem:[%s1332_s6 + $0x18] sm:$0xff] (!%p325_p8)   ;;  %v1060_v38 = vld [vmem:[%s1332_s6 + $0x20] sm:$0xff] (!%p325_p8)   ;;  %v1062_v48 = vld [vmem:[%s1332_s6 + $0x28] sm:$0xff] (!%p325_p8)  }
  0x18   : > { %v397_v7 = vunpack.c.0.s8 (!%p325_p8), %v396_v4  ;;  %983 = vmatpush3.bf16.msra.mxu1 (!%p325_p8), %v1052_v8  ;;  %v1064_v52 = vld [vmem:[%s1332_s6 + $0x30] sm:$0xff] (!%p325_p8)   ;;  %v502_v54 = vld [vmem:[%s1330_s4] sm:$0xf] (!%p325_p8)  ;;  %v1053_v56 = vld [vmem:[%s1331_s5 + $0x8] sm:$0xff] (!%p325_p8)  }
  0x19   : > { %984 = vmatprep.subr.bf16.mxu1 (!%p325_p8), %v1108_v1  ;;  %v445_v12 = vsub.s32 (!%p325_p8), 0, %v399_v5  ;;  %v1051_v55 = vld [vmem:[%s1331_s5] sm:$0xff] (!%p325_p8)   ;;  %v1055_v57 = vld [vmem:[%s1331_s5 + $0x10] sm:$0xff] (!%p325_p8)   ;;  %v1057_v58 = vld [vmem:[%s1331_s5 + $0x18] sm:$0xff] (!%p325_p8)  }
  0x1a   : > { %v400_v10 = vsub.s32 (!%p325_p8), %v397_v7, %v399_v5  ;;  %v1059_v59 = vld [vmem:[%s1331_s5 + $0x20] sm:$0xff] (!%p325_p8)   ;;  %v1061_v60 = vld [vmem:[%s1331_s5 + $0x28] sm:$0xff] (!%p325_p8)   ;;  %v1063_v61 = vld [vmem:[%s1331_s5 + $0x30] sm:$0xff] (!%p325_p8)  }
  0x1b   : > { %v1065_v62 = vld [vmem:[%s1331_s5 + $0x38] sm:$0xff] (!%p325_p8)  }
  0x1c   : > { %v401_v11 = vrot.slane (!%p325_p8), %v392_v2, %v400_v10  ;;  %v408_v13 = vrot.slane (!%p325_p8), %v394_v6, %v400_v10  ;;  %985 = vmatpush3.bf16.msra.mxu1 (!%p325_p8), %v1054_v9  ;;  %v511_v20 = vstv (!%p325_p8), %s1202_s26  ;;  %v1066_v63 = vld [vmem:[%s1332_s6 + $0x38] sm:$0xff] (!%p325_p8)  }
  0x1d   : > { %s1193_s23 = scalar_select %p368_p9, %s1097_s18, 1  ;;  %986 = vmatprep.subr.bf16.mxu1 %v1108_v1  ;;  %vm1230_vm1 = vcmp.eq.s32.totalorder %v399_v5, %v511_v20 }
  0x1e   : > { %v409_v14 = vcombine.high %v401_v11, %v401_v11  ;;  %v417_v15 = vrot.slane %v401_v11, %v400_v10  ;;  %v410_v16 = vcombine.high %v408_v13, %v408_v13  ;;  %v424_v19 = vrot.slane %v408_v13, %v400_v10 }
  0x1f   : > { %s922_s27 = sshll.u32 %s1193_s23, 3  ;;  %s374_s21 = scalar_lea.vmem %s1329_s3, %s1193_s23 }
  0x20   : > { %s371_s12 = scalar_lea.vmem %s1327_s1, %s922_s27  ;;  %v431_v21 = vrot.slane %v409_v14, %v400_v10  ;;  %v439_v22 = vcombine.high %v417_v15, %v417_v15  ;;  %v446_v23 = vrot.slane %v417_v15, %v445_v12  ;;  %v438_v24 = vrot.slane %v410_v16, %v400_v10  ;;  %987 = vmatpush3.bf16.msra.mxu1 %v1056_v17  ;;  %v924_v41 = vld [vmem:[%s374_s21] ss:$0 sm:$0xff]  ;;  %s385_s25 = scalar_lea.vmem %s1336_s10, %s922_s27 }
  0x21   : > { %v1217_v18 = vld [vmem:[%s371_s12] sm:$0xff]  ;;  %v462_v30 = vrot.slane %v424_v19, %v445_v12  ;;  %v440_v32 = vcombine.high %v424_v19, %v424_v19  ;;  %988 = vmatprep.subr.bf16.mxu1 %v1108_v1  ;;  %v520_v43 = vsel %vm1230_vm1, %v924_v41, 0.0 }
  0x22   : > { %v441_v25 = vcombine.high %v431_v21, %v431_v21  ;;  %v450_v26 = vrot.slane %v431_v21, %v445_v12  ;;  %v483_v27 = vmul.f32 %v446_v23, %v1217_v18  ;;  %v454_v28 = vrot.slane %v439_v22, %v445_v12  ;;  %v942_v14 = vld [vmem:[%s1333_s7] ss:$0 sm:$0xff] }
  0x23   : > { %v466_v31 = vrot.slane %v438_v24, %v445_v12  ;;  %v442_v37 = vcombine.high %v438_v24, %v438_v24  ;;  %v487_v42 = vmul.f32 %v462_v30, %v1217_v18  ;;  %v470_v46 = vrot.slane %v440_v32, %v445_v12  ;;  %v943_v30 = vld [vmem:[%s1334_s8] ss:$0 sm:$0xff] }
  0x24   : > { %v484_v34 = vmul.f32 %v450_v26, %v1217_v18  ;;  %v458_v35 = vrot.slane %v441_v25, %v445_v12  ;;  %v485_v36 = vmul.f32 %v454_v28, %v1217_v18  ;;  %989 = vmatpush3.bf16.msra.mxu1 %v1058_v29  ;;  %v565_v2 = vpack.c.bf16 %v1217_v18, %v1217_v18  ;;  %v944_v32 = vld [vmem:[%s1335_s9] ss:$0 sm:$0xff] }
  0x25   : > { %990 = vmatprep.subr.bf16.mxu1 %v1108_v1  ;;  %v488_v45 = vmul.f32 %v466_v31, %v1217_v18  ;;  %v474_v47 = vrot.slane %v442_v37, %v445_v12  ;;  %v489_v50 = vmul.f32 %v470_v46, %v1217_v18  ;;  %v784_v12 = vand.u32 127, %v398_v0 }
  0x26   : > { %v491_v39 = vpack.c.bf16 %v484_v34, %v483_v27  ;;  %v486_v40 = vmul.f32 %v458_v35, %v1217_v18 }
  0x27   : > { %v493_v49 = vpack.c.bf16 %v488_v45, %v487_v42  ;;  %v490_v51 = vmul.f32 %v474_v47, %v1217_v18  ;;  %vm785_vm3 = vcmp.lt.s32.totalorder %v784_v12, 64 }
  0x28   : > { %971 = vmatpush3.bf16.msra.mxu0 %v491_v39  ;;  %v492_v44 = vpack.c.bf16 %v486_v40, %v485_v36  ;;  %991 = vmatpush3.bf16.msra.mxu1 %v1060_v38 }
  0x29   : > { %972 = vmatprep.subr.bf16.mxu0 %v1108_v1  ;;  %992 = vmatprep.subr.bf16.mxu1 %v1108_v1  ;;  %v494_v53 = vpack.c.bf16 %v490_v51, %v489_v50 }
  0x2c   : > { %973 = vmatpush3.bf16.msra.mxu0 %v492_v44  ;;  %993 = vmatpush3.bf16.msra.mxu1 %v1062_v48 }
  0x2d   : > { %974 = vmatprep.subr.bf16.mxu0 %v1108_v1  ;;  %994 = vmatprep.subr.bf16.mxu1 %v1108_v1 }
  0x30   : > { %975 = vmatpush3.bf16.msra.mxu0 %v493_v49  ;;  %995 = vmatpush3.bf16.msra.mxu1 %v1064_v52 }
  0x31   : > { %976 = vmatprep.subr.bf16.mxu0 %v1108_v1  ;;  %996 = vmatprep.subr.bf16.mxu1 %v1108_v1 }
  0x34   : > { %977 = vmatpush3.bf16.msra.mxu0 %v494_v53  ;;  %997 = vmatpush3.bf16.msra.mxu1 %v1066_v63 }
  0x35   : > { %1002 = vmatprep.subr.bf16.mxu0 %v1108_v1 }
  0x37   : > { %979 = vmatmul.mubr.msk.bf16.vlgmr.msra.gmra.mrb[0].mxu0 %vm521_vm2, %v502_v54 }
  0x38   : > { %1003 = vmatpush3.bf16.msra.mxu0 %v1051_v55  ;;  %1018 = vmatprep.mubr.msk.bf16.mxu0 %vm1110_vm0, %v1108_v1 }
  0x39   : > { %1004 = vmatprep.subr.bf16.mxu0 %v1108_v1 }
  0x3c   : > { %1005 = vmatpush3.bf16.msra.mxu0 %v1053_v56 }
  0x3d   : > { %1006 = vmatprep.subr.bf16.mxu0 %v1108_v1 }
  0x40   : > { %1007 = vmatpush3.bf16.msra.mxu0 %v1055_v57 }
  0x41   : > { %1008 = vmatprep.subr.bf16.mxu0 %v1108_v1 }
  0x44   : > { %1009 = vmatpush3.bf16.msra.mxu0 %v1057_v58 }
  0x45   : > { %1010 = vmatprep.subr.bf16.mxu0 %v1108_v1 }
  0x48   : > { %1011 = vmatpush3.bf16.msra.mxu0 %v1059_v59 }
  0x49   : > { %1012 = vmatprep.subr.bf16.mxu0 %v1108_v1 }
  0x4c   : > { %1013 = vmatpush3.bf16.msra.mxu0 %v1061_v60 }
  0x4d   : > { %1014 = vmatprep.subr.bf16.mxu0 %v1108_v1 }
  0x50   : > { %1015 = vmatpush3.bf16.msra.mxu0 %v1063_v61 }
  0x51   : > { %1016 = vmatprep.subr.bf16.mxu0 %v1108_v1 }
  0x54   : > { %1017 = vmatpush3.bf16.msra.mxu0 %v1065_v62 }
  0x57   : > { %1019 = vmatmul.mubr.bf16.vlgmr.msra.gmra.mrb[4].mxu0 %v565_v2 }
 0x10a   : > { %v559_v3 = vpop.f32.mrb[0].mxu0 }
 0x10b   : > { %v560_v4 = vadd.f32 %v559_v3, %v520_v43  ;;  %v980_v5 = vpop.f32.mrb[1].mxu0 }
 0x10c   : > { %v562_v6 = vpop.f32.mrb[2].mxu0 }
 0x10d   : > { %v582_v7 = vpack.c.bf16 %v560_v4, %v560_v4  ;;  %v981_v8 = vpop.f32.mrb[3].mxu0 }
 0x10f   : > { %999 = vmatmul.mubr.bf16.vlgmr.msra.gmra.mrb[0].mxu1 %v582_v7 }
 0x12a   : > { %v769_v9 = vpop.f32.mrb[4].mxu0 }
 0x12b   : > { %v1020_v10 = vpop.f32.mrb[5].mxu0 }
 0x12c   : > { %v772_v1 = vpop.f32.mrb[6].mxu0 }
 0x12d   : > { %v1021_v11 = vpop.f32.mrb[7].mxu0 }
 0x1e2   : > { %v681_v13 = vpop.f32.mrb[0].mxu1 }
 0x1e3   : > { %v770_v15 = vadd.f32 %v769_v9, %v681_v13  ;;  %v1000_v16 = vpop.f32.mrb[1].mxu1 }
 0x1e4   : > { %v684_v17 = vpop.f32.mrb[2].mxu1 }
 0x1e5   : > { %v1001_v19 = vpop.f32.mrb[3].mxu1  ;;  %v782_v20 = vadd.f32 %v942_v14, %v770_v15 }
 0x1e7   : > { %v786_v21 = vsel %vm785_vm3, %v782_v20, 0.0 }
 0x1e8   : > { %787 = vadd.xlane.f32.xlu0 %v786_v21 }
 0x275   : > { %v788_v22 = vpop.xlane.xlu0 %787 }
 0x276   : > { %v789_v23 = vmul.f32 0.015625, %v788_v22 }
 0x278   : > { %v790_v24 = vsub.f32 %v786_v21, %v789_v23 }
 0x27a   : > { %v791_v25 = vsel %vm785_vm3, %v790_v24, 0.0 }
 0x27b   : > { %v792_v26 = vmul.f32 %v791_v25, %v791_v25 }
 0x27d   : > { %793 = vadd.xlane.f32.xlu0 %v792_v26 }
 0x30a   : > { %v794_v0 = vpop.xlane.xlu0 %793 }
 0x30b   : > { %v795_v27 = vmul.f32 0.015625, %v794_v0 }
 0x30d   : > { %v796_v28 = vadd.f32 1e-05, %v795_v27 }
 0x30f   : > { %1067 = vrsqrt.f32 %v796_v28 }
 0x319   : > { %v1068_v29 = vpop.eup %1067 }
 0x31a   : > { %v798_v31 = vmul.f32 %v1068_v29, %v791_v25 }
 0x31c   : > { %v806_v33 = vmul.f32 %v943_v30, %v798_v31 }
 0x31e   : > { %v814_v34 = vadd.f32 %v944_v32, %v806_v33 }
 0x320   : > { %v815_v35 = vmax.f32 %v814_v34, 0.0 }
 0x322   : > { %v816_v36 = vadd.f32 %v815_v35, %v1217_v18 }
 0x324   : > { %817 = vst [vmem:[%s385_s25] sm:$0xff] %v816_v36 }
 0x325 PF: > { %s26_s20 = sadd.s32 1, %s1105_s20   ;;  %s1339_s18 = smov %s1101_s19 }
 0x326   : > { %p23_p10 = scmp.ge.s32.totalorder %s26_s20, 4   ;;  %s1340_s19 = smov %s1342_s0 }
 0x328   :  { %25 = sbr.rel (!%p23_p10) target bundleno = 17 (0x11), region = 97 }

// kernel: ultra_forward.7
= control target key start
LH: loop header
LB: loop body
LE: loop exit
PB: predicated region body
PF: predicated region fallthrough
CT: control target
= control target key end

     0   :  { %s1634_s0 = inlined_call_operand.vmem [shape: s32[2], index: 0, kind: input, shape index: {}]   ;;  %s1635_s1 = inlined_call_operand.vmem [shape: f32[2,32,128], index: 1, kind: input, shape index: {}]   ;;  %s1636_s2 = inlined_call_operand.vmem [shape: f32[2,8,128], index: 2, kind: input, shape index: {}]   ;;  %s1637_s3 = inlined_call_operand.vmem [shape: f32[2,1,128], index: 3, kind: input, shape index: {}]   ;;  %s1638_s4 = inlined_call_operand.vmem [shape: bf16[32,256], index: 4, kind: input, shape index: {}]   ;;  %s1639_s5 = inlined_call_operand.vmem [shape: bf16[128,128], index: 5, kind: input, shape index: {}]   ;;  %s1640_s6 = inlined_call_operand.vmem [shape: bf16[128,128], index: 6, kind: input, shape index: {}]   ;;  %s1641_s7 = inlined_call_operand.vmem [shape: f32[1,128], index: 7, kind: input, shape index: {}]   ;;  %s1642_s8 = inlined_call_operand.vmem [shape: f32[1,128], index: 8, kind: input, shape index: {}]   ;;  %s1643_s9 = inlined_call_operand.vmem [shape: f32[1,128], index: 9, kind: input, shape index: {}]   ;;  %s1644_s10 = inlined_call_operand.vmem [shape: f32[2,32,128], index: 10, kind: output, shape index: {}]  }
   0x1   :  { %s15_s15 = sshll.u32 %s1634_s0, 4  ;;  %s16_s15 = int_to_ptr.vmem [resolvable:$true] %s15_s15 }
   0x2   :  { %s1338_s16 = scalar_lea.vmem %s16_s15, 16  ;;  %p1343_p1 = scmp.lt.s32.totalorder %s16_s15, %s16_s15 }
   0x3   :  { %p1339_p0 = scmp.ne.s32.totalorder %s16_s15, %s1338_s16  ;;  %p1344_p2 = scmp.lt.s32.totalorder %s1338_s16, %s1338_s16 }
   0x5   :  { %p1345_p3 = por %p1344_p2, %p1343_p1 }
   0x7   :  { %p1346_p4 = pnand %p1345_p3, %p1339_p0 }
   0x9   :  { %1349 = shalt.err (!%p1346_p4)  }
   0xa   :  { %s1376_s17 = smov [#allocation4]  }
   0xb   :  { %18 = dma.vmem_to_smem %s16_s15, 16, %s1376_s17, [#allocation3] }
   0xc   :  { %1362 = dma.done.wait [#allocation3], 16 }
   0xd   :  { %1363 = vsyncadd [#allocation3], 4294967280 }
   0xe   :  { %20 = sfence }
   0xf   :  { %s1436_s18 = smov 0   ;;  %s1438_s19 = smov 0  }
  0x10   :  { %s1440_s20 = smov 0  }
  0x11 LB: > { %s38_s0 = sadd.s32 1, %s1370_s19  ;;  %p1155_p5 = scmp.ge.s32.totalorder %s1374_s20, 1  ;;  %s1374_s20 = sphi %s1440_s20, %s26_s20   ;;  %s1370_s19 = sphi %s1438_s19, %s1646_s19   ;;  %s1366_s18 = sphi %s1436_s18, %s1645_s18  }
  0x12   : > { %p40_p6 = scmp.ge.s32.totalorder %s38_s0, 2  ;;  %p337_p7 = scmp.lt.s32.totalorder %s1374_s20, 3 }
  0x14   : > { %s1648_s0 = smov (%p40_p6, %s38_s0), 0  ;;  %p338_p8 = pnand %p1155_p5, %p337_p7 }
  0x15   : > { %p390_p9 = scmp.lt.s32.totalorder (!%p338_p8), %s1366_s18, 1  ;;  %v434_v0 = vlaneseq (!%p338_p8)  ;;  %v1377_v1 = vmov (!%p338_p8), 1966171168   ;;  %v1310_v3 = vld [vmem:[%s1638_s4 + $0x4] ss:$8 sps:$4 sm:$0xff] (!%p338_p8)   ;;  %v1316_v13 = vld [vmem:[%s1640_s6 + $0x10] sm:$0xff] (!%p338_p8)  }
  0x16   : > { %341 = sbr.rel (%p338_p8) target bundleno = 880 (0x370), region = 56  ;;  %v432_v2 = vunpack.c.l.s4 (!%p338_p8), %v1377_v1  ;;  %684 = vmatprep.mubr.bf16.mxu0 (!%p338_p8), %v1310_v3  ;;  %v1314_v6 = vld [vmem:[%s1640_s6] sm:$0xff] (!%p338_p8)   ;;  %v1315_v7 = vld [vmem:[%s1640_s6 + $0x8] sm:$0xff] (!%p338_p8)   ;;  %v1317_v20 = vld [vmem:[%s1640_s6 + $0x18] sm:$0xff] (!%p338_p8)   ;;  %s609_s25 = sld [smem:[#allocation4 + %s1366_s18]] (!%p338_p8) }
  0x17   : > { %v1464_v4 = vshrl.u32 (!%p338_p8), %v434_v0, 7  ;;  %1237 = vmatprep.subr.bf16.mxu1 (!%p338_p8), %v1314_v6 }
  0x18   : > { %v433_v5 = vunpack.c.0.s8 (!%p338_p8), %v432_v2  ;;  %1238 = vmatpush3.bf16.msra.mxu1 (!%p338_p8), %v1314_v6 }
  0x19   : > { %v1484_v11 = vsub.s32 (!%p338_p8), 0, %v1464_v4  ;;  %1239 = vmatprep.subr.bf16.mxu1 (!%p338_p8), %v1315_v7 }
  0x1a   : > { %v436_v8 = vsub.s32 (!%p338_p8), %v433_v5, %v1464_v4 }
  0x1c   : > { %1240 = vmatpush3.bf16.msra.mxu1 (!%p338_p8), %v1315_v7 }
  0x1d   : > { %s1461_s23 = scalar_select %p390_p9, %s1366_s18, 1  ;;  %1241 = vmatprep.subr.bf16.mxu1 %v1316_v13 }
  0x1f   : > { %s1187_s26 = sshll.u32 %s1461_s23, 5  ;;  %s1158_s27 = sshll.u32 %s1461_s23, 3 }
  0x20   : > { %s394_s12 = scalar_lea.vmem %s1635_s1, %s1187_s26  ;;  %s398_s15 = scalar_lea.vmem %s1636_s2, %s1158_s27  ;;  %1242 = vmatpush3.bf16.msra.mxu1 %v1316_v13 }
  0x21   : > { %v428_v9 = vld [vmem:[%s398_s15] sm:$0xff]  ;;  %v1491_v15 = vld [vmem:[%s394_s12 + $0x8] sm:$0xff]  ;;  %v1493_v19 = vld [vmem:[%s394_s12 + $0x10] sm:$0xff]  ;;  %1243 = vmatprep.subr.bf16.mxu1 %v1317_v20  ;;  %s401_s29 = scalar_lea.vmem %s1637_s3, %s1461_s23  ;;  %s417_s15 = scalar_lea.vmem %s1644_s10, %s1187_s26 }
  0x22   : > { %v430_v10 = vcombine.high %v428_v9, %v428_v9  ;;  %v437_v12 = vrot.slane %v428_v9, %v436_v8  ;;  %v1489_v14 = vld [vmem:[%s394_s12] sm:$0xff]  ;;  %v1498_v21 = vld [vmem:[%s394_s12 + $0x18] sm:$0xff] }
  0x24   : > { %v444_v16 = vrot.slane %v430_v10, %v436_v8  ;;  %v445_v17 = vcombine.high %v437_v12, %v437_v12  ;;  %v453_v18 = vrot.slane %v437_v12, %v436_v8  ;;  %1244 = vmatpush3.bf16.msra.mxu1 %v1317_v20 }
  0x26   : > { %v446_v22 = vcombine.high %v444_v16, %v444_v16  ;;  %v460_v23 = vrot.slane %v444_v16, %v436_v8  ;;  %v482_v24 = vrot.slane %v453_v18, %v1484_v11  ;;  %v467_v25 = vrot.slane %v445_v17, %v436_v8 }
  0x27   : > { %v475_v44 = vcombine.high %v453_v18, %v453_v18 }
  0x28   : > { %v498_v26 = vrot.slane %v460_v23, %v1484_v11  ;;  %v519_v27 = vmul.f32 %v482_v24, %v1489_v14  ;;  %v520_v28 = vmul.f32 %v482_v24, %v1491_v15  ;;  %v521_v29 = vmul.f32 %v482_v24, %v1493_v19 }
  0x29   : > { %v474_v30 = vrot.slane %v446_v22, %v436_v8  ;;  %v522_v34 = vmul.f32 %v482_v24, %v1498_v21  ;;  %v486_v38 = vrot.slane %v467_v25, %v1484_v11  ;;  %v476_v39 = vcombine.high %v460_v23, %v460_v23 }
  0x2a   : > { %v535_v31 = vmul.f32 %v498_v26, %v1489_v14  ;;  %v536_v32 = vmul.f32 %v498_v26, %v1491_v15  ;;  %v537_v33 = vmul.f32 %v498_v26, %v1493_v19  ;;  %v551_v35 = vpack.c.bf16 %v520_v28, %v519_v27  ;;  %v1308_v28 = vld [vmem:[%s1638_s4] ss:$8 sps:$4 sm:$0xff]  }
  0x2b   : > { %v538_v36 = vmul.f32 %v498_v26, %v1498_v21  ;;  %v502_v37 = vrot.slane %v474_v30, %v1484_v11  ;;  %v552_v45 = vpack.c.bf16 %v522_v34, %v521_v29  ;;  %v523_v46 = vmul.f32 %v486_v38, %v1489_v14  ;;  %v1311_v29 = vld [vmem:[%s1638_s4 + $0x14] ss:$8 sps:$4 sm:$0xff]  }
  0x2c   : > { %v559_v40 = vpack.c.bf16 %v536_v32, %v535_v31  ;;  %v524_v47 = vmul.f32 %v486_v38, %v1491_v15  ;;  %v506_v51 = vrot.slane %v476_v39, %v1484_v11  ;;  %v525_v53 = vmul.f32 %v486_v38, %v1493_v19  ;;  %v1318_v31 = vld [vmem:[%s1640_s6 + $0x20] sm:$0xff]   ;;  %v1319_v32 = vld [vmem:[%s1640_s6 + $0x28] sm:$0xff]   ;;  %v1321_v34 = vld [vmem:[%s1640_s6 + $0x38] sm:$0xff]  }
  0x2d   : > { %v560_v41 = vpack.c.bf16 %v538_v36, %v537_v33  ;;  %v539_v42 = vmul.f32 %v502_v37, %v1489_v14  ;;  %v540_v43 = vmul.f32 %v502_v37, %v1491_v15  ;;  %v541_v49 = vmul.f32 %v502_v37, %v1493_v19  ;;  %1245 = vmatprep.subr.bf16.mxu1 %v1318_v31  ;;  %v1320_v33 = vld [vmem:[%s1640_s6 + $0x30] sm:$0xff]   ;;  %v1161_v39 = vld [vmem:[%s401_s29] ss:$0 sm:$0xff] }
  0x2e   : > { %1189 = vmatprep.subr.bf16.mxu0 %v559_v40  ;;  %v542_v50 = vmul.f32 %v502_v37, %v1498_v21  ;;  %v553_v52 = vpack.c.bf16 %v524_v47, %v523_v46  ;;  %v526_v54 = vmul.f32 %v486_v38, %v1498_v21  ;;  %v490_v55 = vrot.slane %v475_v44, %v1484_v11 }
  0x2f   : > { %1190 = vmatpush3.bf16.msra.mxu0 %v551_v35  ;;  %v561_v48 = vpack.c.bf16 %v540_v43, %v539_v42  ;;  %v543_v57 = vmul.f32 %v506_v51, %v1489_v14  ;;  %v544_v58 = vmul.f32 %v506_v51, %v1491_v15  ;;  %v478_v59 = vcombine.high %v474_v30, %v474_v30  ;;  %v1313_v30 = vld [vmem:[%s1638_s4 + $0x10] ss:$8 sps:$4 sm:$0xff]   ;;  %v1322_v35 = vld [vmem:[%s1639_s5] sm:$0xff]  }
  0x30   : > { %1191 = vmatprep.subr.bf16.mxu0 %v560_v41  ;;  %v562_v56 = vpack.c.bf16 %v542_v50, %v541_v49  ;;  %v554_v60 = vpack.c.bf16 %v526_v54, %v525_v53  ;;  %v527_v61 = vmul.f32 %v490_v55, %v1489_v14  ;;  %v528_v62 = vmul.f32 %v490_v55, %v1491_v15 }
  0x31   : > { %v477_v63 = vcombine.high %v467_v25, %v467_v25  ;;  %v563_v1 = vpack.c.bf16 %v544_v58, %v543_v57  ;;  %v545_v2 = vmul.f32 %v506_v51, %v1493_v19  ;;  %v546_v3 = vmul.f32 %v506_v51, %v1498_v21  ;;  %1246 = vmatpush3.bf16.msra.mxu1 %v1318_v31 }
  0x32   : > { %v510_v5 = vrot.slane %v478_v59, %v1484_v11  ;;  %v555_v6 = vpack.c.bf16 %v528_v62, %v527_v61  ;;  %v529_v7 = vmul.f32 %v490_v55, %v1493_v19  ;;  %v530_v8 = vmul.f32 %v490_v55, %v1498_v21  ;;  %1247 = vmatprep.subr.bf16.mxu1 %v1319_v32 }
  0x33   : > { %1192 = vmatpush3.bf16.msra.mxu0 %v552_v45  ;;  %v494_v9 = vrot.slane %v477_v63, %v1484_v11  ;;  %v564_v10 = vpack.c.bf16 %v546_v3, %v545_v2  ;;  %v613_v36 = vadd.s32 8, %v1464_v4  ;;  %v616_v37 = vstv %s609_s25  ;;  %v1323_v63 = vld [vmem:[%s1639_s5 + $0x8] sm:$0xff]   ;;  %v1325_v2 = vld [vmem:[%s1639_s5 + $0x18] sm:$0xff]   ;;  %v1326_v3 = vld [vmem:[%s1639_s5 + $0x20] sm:$0xff]  }
  0x34   : > { %1193 = vmatprep.subr.bf16.mxu0 %v561_v48  ;;  %v547_v12 = vmul.f32 %v510_v5, %v1489_v14  ;;  %v548_v13 = vmul.f32 %v510_v5, %v1491_v15  ;;  %v556_v16 = vpack.c.bf16 %v530_v8, %v529_v7  ;;  %v549_v22 = vmul.f32 %v510_v5, %v1493_v19  ;;  %v1329_v7 = vld [vmem:[%s1639_s5 + $0x38] sm:$0xff]  }
  0x35   : > { %v531_v17 = vmul.f32 %v494_v9, %v1489_v14  ;;  %v532_v18 = vmul.f32 %v494_v9, %v1491_v15  ;;  %v550_v23 = vmul.f32 %v510_v5, %v1498_v21  ;;  %v533_v24 = vmul.f32 %v494_v9, %v1493_v19  ;;  %1248 = vmatpush3.bf16.msra.mxu1 %v1319_v32  ;;  %v1327_v5 = vld [vmem:[%s1639_s5 + $0x28] sm:$0xff]  }
  0x36   : > { %v565_v20 = vpack.c.bf16 %v548_v13, %v547_v12  ;;  %v534_v25 = vmul.f32 %v494_v9, %v1498_v21  ;;  %1249 = vmatprep.subr.bf16.mxu1 %v1320_v33  ;;  %vm617_vm0 = vcmp.eq.s32.totalorder %v1464_v4, %v616_v37  ;;  %vm618_vm1 = vcmp.eq.s32.totalorder %v613_v36, %v616_v37 }
  0x37   : > { %1194 = vmatpush3.bf16.msra.mxu0 %v553_v52  ;;  %v557_v11 = vpack.c.bf16 %v532_v18, %v531_v17  ;;  %v566_v26 = vpack.c.bf16 %v550_v23, %v549_v22  ;;  %v628_v44 = vsel %vm617_vm0, %v1161_v39, 0.0  ;;  %v629_v45 = vsel %vm618_vm1, %v1161_v39, 0.0 }
  0x38   : > { %1195 = vmatprep.subr.bf16.mxu0 %v562_v56  ;;  %v558_v27 = vpack.c.bf16 %v534_v25, %v533_v24  ;;  %v614_v47 = vadd.s32 16, %v1464_v4  ;;  %v615_v48 = vadd.s32 24, %v1464_v4  ;;  %v701_v62 = vpack.c.bf16 %v1491_v15, %v1489_v14 }
  0x39   : > { %1250 = vmatpush3.bf16.msra.mxu1 %v1320_v33  ;;  %v702_v8 = vpack.c.bf16 %v1498_v21, %v1493_v19  ;;  %v943_v9 = vand.u32 127, %v434_v0 }
  0x3a   : > { %1251 = vmatprep.subr.bf16.mxu1 %v1321_v34  ;;  %vm619_vm2 = vcmp.eq.s32.totalorder %v614_v47, %v616_v37  ;;  %vm620_vm3 = vcmp.eq.s32.totalorder %v615_v48, %v616_v37 }
  0x3b   : > { %1196 = vmatpush3.bf16.msra.mxu0 %v554_v60  ;;  %v630_v56 = vsel %vm619_vm2, %v1161_v39, 0.0  ;;  %v631_v57 = vsel %vm620_vm3, %v1161_v39, 0.0  ;;  %vm944_vm4 = vcmp.lt.s32.totalorder %v943_v9, 64 }
  0x3c   : > { %1197 = vmatprep.subr.bf16.mxu0 %v563_v1  ;;  %v1324_v1 = vld [vmem:[%s1639_s5 + $0x10] sm:$0xff]  }
  0x3d   : > { %1252 = vmatpush3.bf16.msra.mxu1 %v1321_v34 }
  0x3e   : > { %1257 = vmatprep.subr.bf16.mxu1 %v1322_v35 }
  0x3f   : > { %1198 = vmatpush3.bf16.msra.mxu0 %v555_v6  ;;  %v1328_v6 = vld [vmem:[%s1639_s5 + $0x30] sm:$0xff]  }
  0x40   : > { %1199 = vmatprep.subr.bf16.mxu0 %v564_v10  ;;  %v1182_v10 = vld [vmem:[%s1641_s7] ss:$0 sm:$0xff] }
  0x43   : > { %1200 = vmatpush3.bf16.msra.mxu0 %v556_v16 }
  0x44   : > { %1201 = vmatprep.subr.bf16.mxu0 %v565_v20 }
  0x47   : > { %1202 = vmatpush3.bf16.msra.mxu0 %v557_v11 }
  0x48   : > { %1203 = vmatprep.subr.bf16.mxu0 %v566_v26 }
  0x4b   : > { %1204 = vmatpush3.bf16.msra.mxu0 %v558_v27 }
  0x4e   : > { %685 = vmatmul.mubr.bf16.vlgmr.msra.gmra.mrb[0].mxu0 %v1308_v28 }
  0x4f   : > { %692 = vmatprep.mubr.bf16.mxu0 %v1311_v29 }
  0x56   : > { %693 = vmatmul.mubr.bf16.gmra.mrb[4].mxu0 %v1313_v30 }
 0x121   : > { %v1205_v38 = vpop.f32.mrb[0].mxu0 }
 0x122   : > { %v1206_v40 = vpop.f32.mrb[1].mxu0 }
 0x123   : > { %v1207_v41 = vadd.f32 %v1206_v40, %v1205_v38  ;;  %v1208_v42 = vpop.f32.mrb[2].mxu0 }
 0x124   : > { %v1209_v43 = vpop.f32.mrb[3].mxu0 }
 0x125   : > { %v1210_v46 = vadd.f32 %v1209_v43, %v1208_v42  ;;  %v687_v49 = vadd.f32 %v1207_v41, %v628_v44 }
 0x127   : > { %v690_v50 = vadd.f32 %v1210_v46, %v629_v45 }
 0x129   : > { %v1211_v51 = vpop.f32.mrb[4].mxu0  ;;  %v719_v52 = vpack.c.bf16 %v690_v50, %v687_v49 }
 0x12a   : > { %v1212_v53 = vpop.f32.mrb[5].mxu0 }
 0x12b   : > { %v1213_v54 = vadd.f32 %v1212_v53, %v1211_v51  ;;  %v1214_v55 = vpop.f32.mrb[6].mxu0  ;;  %1253 = vmatprep.mubr.bf16.mxu1 %v719_v52 }
 0x12c   : > { %v1215_v58 = vpop.f32.mrb[7].mxu0 }
 0x12d   : > { %v1216_v59 = vadd.f32 %v1215_v58, %v1214_v55  ;;  %v695_v60 = vadd.f32 %v1213_v54, %v630_v56 }
 0x12f   : > { %v698_v61 = vadd.f32 %v1216_v59, %v631_v57  ;;  %v1183_v59 = vld [vmem:[%s1642_s8] ss:$0 sm:$0xff] }
 0x131   : > { %v720_v4 = vpack.c.bf16 %v698_v61, %v695_v60  ;;  %v1184_v61 = vld [vmem:[%s1643_s9] ss:$0 sm:$0xff] }
 0x133   : > { %1254 = vmatmul.mubr.bf16.vlgmr.msra.gmra.mrb[0].mxu1 %v720_v4 }
 0x134   : > { %1258 = vmatpush3.bf16.msra.mxu1 %v1322_v35  ;;  %1273 = vmatprep.mubr.bf16.mxu1 %v701_v62 }
 0x135   : > { %1259 = vmatprep.subr.bf16.mxu1 %v1323_v63 }
 0x138   : > { %1260 = vmatpush3.bf16.msra.mxu1 %v1323_v63 }
 0x139   : > { %1261 = vmatprep.subr.bf16.mxu1 %v1324_v1 }
 0x13c   : > { %1262 = vmatpush3.bf16.msra.mxu1 %v1324_v1 }
 0x13d   : > { %1263 = vmatprep.subr.bf16.mxu1 %v1325_v2 }
 0x140   : > { %1264 = vmatpush3.bf16.msra.mxu1 %v1325_v2 }
 0x141   : > { %1265 = vmatprep.subr.bf16.mxu1 %v1326_v3 }
 0x144   : > { %1266 = vmatpush3.bf16.msra.mxu1 %v1326_v3 }
 0x145   : > { %1267 = vmatprep.subr.bf16.mxu1 %v1327_v5 }
 0x148   : > { %1268 = vmatpush3.bf16.msra.mxu1 %v1327_v5 }
 0x149   : > { %1269 = vmatprep.subr.bf16.mxu1 %v1328_v6 }
 0x14c   : > { %1270 = vmatpush3.bf16.msra.mxu1 %v1328_v6 }
 0x14d   : > { %1271 = vmatprep.subr.bf16.mxu1 %v1329_v7 }
 0x150   : > { %1272 = vmatpush3.bf16.msra.mxu1 %v1329_v7 }
 0x153   : > { %1274 = vmatmul.mubr.bf16.vlgmr.msra.gmra.mrb[0].mxu1 %v702_v8 }
 0x226   : > { %v1275_v12 = vpop.f32.mrb[0].mxu1 }
 0x227   : > { %v940_v13 = vadd.f32 %v1275_v12, %v1182_v10  ;;  %v916_v16 = vpop.f32.mrb[1].mxu1 }
 0x228   : > { %v938_v17 = vadd.f32 %v1182_v10, %v916_v16  ;;  %v1276_v18 = vpop.f32.mrb[2].mxu1 }
 0x229   : > { %v941_v20 = vadd.f32 %v1276_v18, %v1182_v10  ;;  %v919_v22 = vpop.f32.mrb[3].mxu1  ;;  %v947_v23 = vsel %vm944_vm4, %v940_v13, 0.0 }
 0x22a   : > { %v939_v11 = vadd.f32 %v1182_v10, %v919_v22  ;;  %953 = vadd.xlane.f32.xlu1 %v947_v23  ;;  %v945_v24 = vsel %vm944_vm4, %v938_v17, 0.0 }
 0x22b   : > { %949 = vadd.xlane.f32.xlu0 %v945_v24  ;;  %v948_v0 = vsel %vm944_vm4, %v941_v20, 0.0 }
 0x22c   : > { %v946_v25 = vsel %vm944_vm4, %v939_v11, 0.0 }
 0x22e   : > { %955 = vadd.xlane.f32.xlu1 %v948_v0 }
 0x22f   : > { %951 = vadd.xlane.f32.xlu0 %v946_v25 }
 0x2b7   : > { %v954_v26 = vpop.xlane.xlu1 %953 }
 0x2b8   : > { %v959_v27 = vmul.f32 0.015625, %v954_v26  ;;  %v950_v28 = vpop.xlane.xlu0 %949 }
 0x2b9   : > { %v957_v29 = vmul.f32 0.015625, %v950_v28 }
 0x2ba   : > { %v963_v30 = vsub.f32 %v947_v23, %v959_v27 }
 0x2bb   : > { %v961_v31 = vsub.f32 %v945_v24, %v957_v29  ;;  %v956_v32 = vpop.xlane.xlu1 %955 }
 0x2bc   : > { %v960_v33 = vmul.f32 0.015625, %v956_v32  ;;  %v952_v34 = vpop.xlane.xlu0 %951  ;;  %v967_v40 = vsel %vm944_vm4, %v963_v30, 0.0 }
 0x2bd   : > { %v958_v35 = vmul.f32 0.015625, %v952_v34  ;;  %v965_v36 = vsel %vm944_vm4, %v961_v31, 0.0  ;;  %v971_v42 = vmul.f32 %v967_v40, %v967_v40 }
 0x2be   : > { %v969_v37 = vmul.f32 %v965_v36, %v965_v36  ;;  %v964_v38 = vsub.f32 %v948_v0, %v960_v33 }
 0x2bf   : > { %v962_v39 = vsub.f32 %v946_v25, %v958_v35 }
 0x2c0   : > { %973 = vadd.xlane.f32.xlu0 %v969_v37  ;;  %v968_v44 = vsel %vm944_vm4, %v964_v38, 0.0 }
 0x2c1   : > { %v966_v41 = vsel %vm944_vm4, %v962_v39, 0.0  ;;  %v972_v45 = vmul.f32 %v968_v44, %v968_v44 }
 0x2c2   : > { %v970_v43 = vmul.f32 %v966_v41, %v966_v41 }
 0x2c4   : > { %977 = vadd.xlane.f32.xlu0 %v971_v42  ;;  %975 = vadd.xlane.f32.xlu1 %v970_v43 }
 0x2c8   : > { %979 = vadd.xlane.f32.xlu1 %v972_v45 }
 0x34d   : > { %v974_v46 = vpop.xlane.xlu0 %973 }
 0x34e   : > { %v981_v47 = vmul.f32 0.015625, %v974_v46 }
 0x350   : > { %v985_v48 = vadd.f32 1e-05, %v981_v47 }
 0x351   : > { %v976_v49 = vpop.xlane.xlu1 %975  ;;  %v978_v50 = vpop.xlane.xlu0 %977 }
 0x352   : > { %1330 = vrsqrt.f32 %v985_v48  ;;  %v982_v51 = vmul.f32 0.015625, %v976_v49  ;;  %v983_v52 = vmul.f32 0.015625, %v978_v50 }
 0x354   : > { %v986_v53 = vadd.f32 1e-05, %v982_v51  ;;  %v987_v54 = vadd.f32 1e-05, %v983_v52 }
 0x355   : > { %v980_v55 = vpop.xlane.xlu1 %979 }
 0x356   : > { %1332 = vrsqrt.f32 %v986_v53  ;;  %v984_v56 = vmul.f32 0.015625, %v980_v55 }
 0x357   : > { %1334 = vrsqrt.f32 %v987_v54 }
 0x358   : > { %v988_v57 = vadd.f32 1e-05, %v984_v56 }
 0x35a   : > { %1336 = vrsqrt.f32 %v988_v57 }
 0x35c   : > { %v1331_v58 = vpop.eup %1330 }
 0x35d   : > { %v993_v60 = vmul.f32 %v1331_v58, %v965_v36 }
 0x35f   : > { %v1004_v62 = vmul.f32 %v1183_v59, %v993_v60 }
 0x360   : > { %v1333_v4 = vpop.eup %1332 }
 0x361   : > { %v1335_v63 = vpop.eup %1334  ;;  %v1015_v1 = vadd.f32 %v1184_v61, %v1004_v62  ;;  %v994_v2 = vmul.f32 %v1333_v4, %v966_v41 }
 0x362   : > { %v995_v3 = vmul.f32 %v1335_v63, %v967_v40 }
 0x363   : > { %v1019_v5 = vmax.f32 %v1015_v1, 0.0  ;;  %v1005_v6 = vmul.f32 %v1183_v59, %v994_v2 }
 0x364   : > { %v1337_v7 = vpop.eup %1336  ;;  %v1006_v8 = vmul.f32 %v1183_v59, %v995_v3 }
 0x365   : > { %v1023_v9 = vadd.f32 %v1019_v5, %v1489_v14  ;;  %v1016_v10 = vadd.f32 %v1184_v61, %v1005_v6  ;;  %v996_v12 = vmul.f32 %v1337_v7, %v968_v44 }
 0x366   : > { %v1017_v13 = vadd.f32 %v1184_v61, %v1006_v8 }
 0x367   : > { %1027 = vst [vmem:[%s417_s15] sm:$0xff] %v1023_v9  ;;  %v1020_v16 = vmax.f32 %v1016_v10, 0.0  ;;  %v1007_v17 = vmul.f32 %v1183_v59, %v996_v12 }
 0x368   : > { %v1021_v18 = vmax.f32 %v1017_v13, 0.0 }
 0x369   : > { %v1024_v20 = vadd.f32 %v1020_v16, %v1491_v15  ;;  %v1018_v22 = vadd.f32 %v1184_v61, %v1007_v17 }
 0x36a   : > { %v1025_v23 = vadd.f32 %v1021_v18, %v1493_v19 }
 0x36b   : > { %1028 = vst [vmem:[%s417_s15 + $0x8] sm:$0xff] %v1024_v20  ;;  %v1022_v11 = vmax.f32 %v1018_v22, 0.0 }
 0x36c   : > { %1029 = vst [vmem:[%s417_s15 + $0x10] sm:$0xff] %v1025_v23 }
 0x36d   : > { %v1026_v24 = vadd.f32 %v1022_v11, %v1498_v21 }
 0x36f   : > { %1030 = vst [vmem:[%s417_s15 + $0x18] sm:$0xff] %v1026_v24 }
 0x370 PF: > { %s26_s20 = sadd.s32 1, %s1374_s20   ;;  %s1645_s18 = smov %s1370_s19 }
 0x371   : > { %p23_p10 = scmp.ge.s32.totalorder %s26_s20, 4   ;;  %s1646_s19 = smov %s1648_s0 }
 0x373   :  { %25 = sbr.rel (!%p23_p10) target bundleno = 17 (0x11), region = 100 }

</bundles_post_ra>
